<compile_context>
chip_gen: v7x
topology: tpu7x:2x2x1
jax: 0.10.0
libtpu: 0.0.40
codegen_flags: <defaults>
</compile_context>

<pallas_src>
import math
import functools

import jax
import jax.numpy as jnp
import numpy as np
from jax import lax
from jax.experimental import pallas as pl
from jax.experimental.pallas import tpu as pltpu


def _round_up(x, d):
    return -(-x // d) * d


_NEG = -1e30  # "minus infinity" that stays finite under f32 arithmetic


# ----------------------------------------------------------------------------
# Fused kernel: per-pixel MLP -> VMEM scratch; last row-tile: Sinkhorn + aggregation.
# ----------------------------------------------------------------------------
def _salad_fused_kernel(x_ref, w1_ref, b1_ref, w2_ref, b2_ref, outA_ref,
                        f_sc, z_sc, *, l, m, n, tm, l_pad, m1_pad, iters):
    i = pl.program_id(1)

    # ---------------- per-pixel fused MLP: [ f | p | dust | pad ] ----------------
    x = x_ref[0]                                                       # [tm, C] bf16
    h = jnp.dot(x, w1_ref[...], preferred_element_type=jnp.float32)    # [tm, 2H] f32 acc
    h = jnp.maximum(h + b1_ref[...], 0.0)
    y = jnp.dot(h.astype(jnp.bfloat16), w2_ref[...],
                preferred_element_type=jnp.float32) + b2_ref[...]      # [tm, l_pad + m1_pad]
    row0 = pl.multiple_of(i * tm, tm)
    # 128-aligned lane split -> zero-cost views, lane-dense stores into per-batch scratch.
    f_sc[pl.ds(row0, tm), :] = y[:, :l_pad]
    z_sc[pl.ds(row0, tm), :] = y[:, l_pad:]

    # ---------- last row tile of this batch: log-Sinkhorn + aggregation ----------
    @pl.when(i == pl.num_programs(1) - 1)
    def _():
        n_pad = f_sc.shape[0]
        neg = jnp.float32(_NEG)
        norm = jnp.float32(-math.log(m + n))           # -(ms + ns).log()
        bs_log = jnp.float32(math.log(n - m))          # (n - m).log()

        col = lax.broadcasted_iota(jnp.int32, (1, m1_pad), 1)
        lane_ok = col < (m + 1)
        log_mu = jnp.where(col < m, norm,
                           jnp.where(col == m, bs_log + norm, neg))    # [1, m1_pad]

        # couplings^T (scores | dust | pad) in the MLP's natural [N, m1_pad] layout.
        Zt = jnp.where(lane_ok, z_sc[...], neg)                        # mask pad lanes
        if n_pad != n:
            row = lax.broadcasted_iota(jnp.int32, (n_pad, 1), 0)
            row_ok = row < n
            Zt = jnp.where(row_ok, Zt, neg)                            # mask pad rows

        ones8 = jnp.ones((8, n_pad), jnp.float32)                      # MXU column-sum helper
        u = jnp.zeros((1, m1_pad), jnp.float32)
        v = jnp.zeros((n_pad, 1), jnp.float32)
        for _ in range(iters):                                         # all Sinkhorn math in f32
            # logsumexp over pixels (axis 0): max on XLU, sum as ones-row MXU matmul.
            zc = Zt + v
            zm = jnp.max(zc, axis=0, keepdims=True)
            s = jnp.dot(ones8, jnp.exp(zc - zm),
                        preferred_element_type=jnp.float32)[0:1, :]
            u = log_mu - (zm + jnp.log(s))
            u = jnp.where(lane_ok, u, 0.0)
            # logsumexp over clusters (axis 1, lanes).
            zr = Zt + u
            zm2 = jnp.max(zr, axis=1, keepdims=True)
            s2 = jnp.sum(jnp.exp(zr - zm2), axis=1, keepdims=True)
            v = norm - (zm2 + jnp.log(s2))
            if n_pad != n:
                v = jnp.where(row_ok, v, neg)

        P = jnp.exp(Zt + u + v - norm)                                 # [n_pad, m1_pad]

        # A[i, j] = sum_n f[n, i] * P[n, j]  ->  f^T @ P (dim-0/dim-0 contraction, no transpose).
        # Dust / pad columns come out for free and are dropped in the wrapper.
        A = lax.dot_general(f_sc[...], P, (((0,), (0,)), ((), ())),
                            preferred_element_type=jnp.float32)        # [l_pad, m1_pad]
        cn = jnp.sqrt(jnp.sum(A * A, axis=0, keepdims=True))           # L2 over cluster_dim
        A = A * pl.reciprocal(jnp.maximum(cn, 1e-12), approx=True)
        outA_ref[0] = A


# ----------------------------------------------------------------------------
# Full forward
# ----------------------------------------------------------------------------
@functools.partial(jax.jit, static_argnums=(3, 4, 5))
def salad_forward(params, x, t, num_clusters, cluster_dim, token_dim):
    B, C, H, Wd = x.shape
    N = H * Wd
    m, l = num_clusters, cluster_dim
    if N <= m:
        raise ValueError("SALAD requires H*W > num_clusters (log(N - m)).")
    hidden = params["cf_w1"].shape[1]

    l_pad = _round_up(l, 128)
    m1_pad = _round_up(m + 1, 128)
    w_out = l_pad + m1_pad                       # 256 for typical SALAD -> fills 256-wide MXU

    # ---- pack cluster_features + score (+ dust bin) into one fused, lane-padded MLP ----
    w1cat = jnp.concatenate([params["cf_w1"], params["sc_w1"]], axis=1)        # [C, 2H]
    b1cat = jnp.concatenate([params["cf_b1"], params["sc_b1"]], axis=0)        # [2H]
    w2blk = jnp.zeros((2 * hidden, w_out), jnp.float32)
    w2blk = w2blk.at[:hidden, :l].set(params["cf_w2"])                         # -> f block
    w2blk = w2blk.at[hidden:, l_pad:l_pad + m].set(params["sc_w2"])            # -> score block
    b2cat = jnp.zeros((w_out,), jnp.float32)
    b2cat = b2cat.at[:l].set(params["cf_b2"])
    b2cat = b2cat.at[l_pad:l_pad + m].set(params["sc_b2"])
    b2cat = b2cat.at[l_pad + m].set(params["dust_bin"].astype(jnp.float32))    # dust column bias

    # NCHW -> [B, N, C] rows (bf16 MXU operands; accumulation stays f32 in-kernel)
    x_bnc = jnp.transpose(x.astype(jnp.bfloat16).reshape(B, C, N), (0, 2, 1))  # [B, N, C]

    tm = 512 if N >= 512 else _round_up(N, 8)
    n_pad = _round_up(N, tm)
    if n_pad != N:
        x_bnc = jnp.pad(x_bnc, ((0, 0), (0, n_pad - N), (0, 0)))

    kern = functools.partial(_salad_fused_kernel, l=l, m=m, n=N, tm=tm,
                             l_pad=l_pad, m1_pad=m1_pad, iters=3)
    outA = pl.pallas_call(
        kern,
        out_shape=jax.ShapeDtypeStruct((B, l_pad, m1_pad), jnp.float32),
        grid=(B, n_pad // tm),
        in_specs=[pl.BlockSpec((1, tm, C), lambda b, i: (b, i, 0)),            # pixel stream
                  pl.BlockSpec((C, 2 * hidden), lambda b, i: (0, 0)),          # resident weights
                  pl.BlockSpec((1, 2 * hidden), lambda b, i: (0, 0)),
                  pl.BlockSpec((2 * hidden, w_out), lambda b, i: (0, 0)),
                  pl.BlockSpec((1, w_out), lambda b, i: (0, 0))],
        out_specs=pl.BlockSpec((1, l_pad, m1_pad), lambda b, i: (b, 0, 0)),
        scratch_shapes=[pltpu.VMEM((n_pad, l_pad), jnp.float32),               # f  (per batch)
                        pltpu.VMEM((n_pad, m1_pad), jnp.float32)],             # Z^T (per batch)
        compiler_params=pltpu.CompilerParams(
            dimension_semantics=("parallel", "arbitrary"),
            vmem_limit_bytes=32 * 1024 * 1024),
    )(x_bnc, w1cat.astype(jnp.bfloat16), b1cat.reshape(1, -1),
      w2blk.astype(jnp.bfloat16), b2cat.reshape(1, -1))

    A_flat = outA[:, :l, :m].reshape(B, l * m)                                 # torch flatten order

    # token MLP: only B rows of work -> plain XLA (a kernel launch would be pure overhead)
    th = jnp.maximum(jnp.dot(t, params["tk_w1"], precision="highest") + params["tk_b1"], 0.0)
    tfeat = jnp.dot(th, params["tk_w2"], precision="highest") + params["tk_b2"]
    tfeat = tfeat / jnp.maximum(
        jnp.sqrt(jnp.sum(tfeat * tfeat, axis=-1, keepdims=True)), 1e-12)

    feat = jnp.concatenate([tfeat, A_flat], axis=-1)
    nrm = jnp.sqrt(jnp.sum(feat * feat, axis=-1, keepdims=True))
    return feat / jnp.maximum(nrm, 1e-12)


# ----------------------------------------------------------------------------
# Pure-JAX reference (mirrors the PyTorch forward) for correctness checking
# ----------------------------------------------------------------------------
def ref_forward(params, x, t, num_clusters, cluster_dim, token_dim):
    B, C, H, W = x.shape
    N = H * W
    m, l = num_clusters, cluster_dim

    def mlp(xm, w1, b1, w2, b2):
        h = jnp.maximum(jnp.dot(xm, w1, precision="highest") + b1, 0.0)
        return jnp.dot(h, w2, precision="highest") + b2

    x_flat = jnp.transpose(x.reshape(B, C, N), (0, 2, 1))                 # [B, N, C]
    f = jnp.transpose(mlp(x_flat, params["cf_w1"], params["cf_b1"],
                          params["cf_w2"], params["cf_b2"]), (0, 2, 1))   # [B, l, N]
    p = jnp.transpose(mlp(x_flat, params["sc_w1"], params["sc_b1"],
                          params["sc_w2"], params["sc_b2"]), (0, 2, 1))   # [B, m, N]
    tf = mlp(t, params["tk_w1"], params["tk_b1"], params["tk_w2"], params["tk_b2"])

    norm = -jnp.log(jnp.float32(m + N))
    couplings = jnp.concatenate(
        [p, jnp.broadcast_to(params["dust_bin"], (B, 1, N)).astype(jnp.float32)], axis=1)
    log_mu = jnp.concatenate([jnp.full((m,), norm),
                              jnp.log(jnp.float32(N - m))[None] + norm])
    log_nu = jnp.full((N,), norm)
    u = jnp.zeros((B, m + 1)); v = jnp.zeros((B, N))
    for _ in range(3):
        u = log_mu[None] - jax.scipy.special.logsumexp(couplings + v[:, None, :], axis=2)
        v = log_nu[None] - jax.scipy.special.logsumexp(couplings + u[:, :, None], axis=1)
    Z = couplings + u[:, :, None] + v[:, None, :] - norm
    P = jnp.exp(Z)[:, :-1, :]

    A = jnp.einsum("bln,bmn->blm", f, P, precision="highest")
    A = A / jnp.maximum(jnp.sqrt(jnp.sum(A * A, axis=1, keepdims=True)), 1e-12)
    tf = tf / jnp.maximum(jnp.sqrt(jnp.sum(tf * tf, axis=-1, keepdims=True)), 1e-12)
    feat = jnp.concatenate([tf, A.reshape(B, -1)], axis=-1)
    return feat / jnp.maximum(jnp.sqrt(jnp.sum(feat * feat, axis=-1, keepdims=True)), 1e-12)


if __name__ == "__main__":
    # Small, shape-consistent config
    B, C, H, W = 2, 32, 8, 8          # num_channels = 32, spatial 8x8 -> N = 64
    num_clusters, cluster_dim, token_dim, hidden = 8, 16, 32, 512

    key = jax.random.PRNGKey(0)
    ks = iter(jax.random.split(key, 20))

    def init(shape, scale=0.05):
        return (jax.random.normal(next(ks), shape, jnp.float32) * scale)

    params = {
        # token_features: Linear(C,512) -> ReLU -> Linear(512, token_dim)
        "tk_w1": init((C, hidden)), "tk_b1": init((hidden,)),
        "tk_w2": init((hidden, token_dim)), "tk_b2": init((token_dim,)),
        # cluster_features: Conv1x1(C,512) -> ReLU -> Conv1x1(512, cluster_dim)
        "cf_w1": init((C, hidden)), "cf_b1": init((hidden,)),
        "cf_w2": init((hidden, cluster_dim)), "cf_b2": init((cluster_dim,)),
        # score: Conv1x1(C,512) -> ReLU -> Conv1x1(512, num_clusters)
        "sc_w1": init((C, hidden)), "sc_b1": init((hidden,)),
        "sc_w2": init((hidden, num_clusters)), "sc_b2": init((num_clusters,)),
        # dust bin
        "dust_bin": jnp.float32(1.0),
    }

    x = jax.random.normal(next(ks), (B, C, H, W), jnp.float32)
    t = jax.random.normal(next(ks), (B, C), jnp.float32)

    out = salad_forward(params, x, t, num_clusters, cluster_dim, token_dim)
    out = jax.block_until_ready(out)

    assert out.shape == (B, token_dim + num_clusters * cluster_dim)

    ref = ref_forward(params, x, t, num_clusters, cluster_dim, token_dim)
    # bf16 MXU operands in the fused MLP (f32 accumulation) -> slightly looser tolerance.
    np.testing.assert_allclose(np.asarray(out), np.asarray(ref), atol=5e-3, rtol=5e-3)

    print("KERNEL_OK")
</pallas_src>

<mosaic_0001>
module attributes {stable_mosaic.version = 11 : i64} {
  func.func @_salad_fused_kernel(%arg0: i32, %arg1: i32, %arg2: memref<1x64x32xbf16, #tpu.memory_space<vmem>>, %arg3: memref<32x1024xbf16, #tpu.memory_space<vmem>>, %arg4: memref<1x1024xf32, #tpu.memory_space<vmem>>, %arg5: memref<1024x256xbf16, #tpu.memory_space<vmem>>, %arg6: memref<1x256xf32, #tpu.memory_space<vmem>>, %arg7: memref<1x128x128xf32, #tpu.memory_space<vmem>>, %arg8: memref<64x128xf32, #tpu.memory_space<vmem>>, %arg9: memref<64x128xf32, #tpu.memory_space<vmem>>) attributes {dimension_semantics = [#tpu.dimension_semantics<parallel>, #tpu.dimension_semantics<arbitrary>], iteration_bounds = array<i64: 2, 1>, scalar_prefetch = 0 : i64, scratch_operands = 2 : i64, tpu.core_type = #tpu.core_type<tc>, window_params = [{transform_indices = @transform_0, window_bounds = array<i64: 1, 64, 32>}, {pipeline_mode = #tpu.pipeline_mode<synchronous>, transform_indices = @transform_1, window_bounds = array<i64: 32, 1024>}, {pipeline_mode = #tpu.pipeline_mode<synchronous>, transform_indices = @transform_2, window_bounds = array<i64: 1, 1024>}, {pipeline_mode = #tpu.pipeline_mode<synchronous>, transform_indices = @transform_3, window_bounds = array<i64: 1024, 256>}, {pipeline_mode = #tpu.pipeline_mode<synchronous>, transform_indices = @transform_4, window_bounds = array<i64: 1, 256>}, {transform_indices = @transform_5, window_bounds = array<i64: 1, 128, 128>}]} {
    %c0 = arith.constant 0 : index
    %c0_0 = arith.constant 0 : index
    %c0_1 = arith.constant 0 : index
    %0 = vector.load %arg2[%c0, %c0_0, %c0_1] : memref<1x64x32xbf16, #tpu.memory_space<vmem>>, vector<1x64x32xbf16>
    %1 = vector.shape_cast %0 : vector<1x64x32xbf16> to vector<64x32xbf16>
    %c0_2 = arith.constant 0 : index
    %c0_3 = arith.constant 0 : index
    %2 = vector.load %arg3[%c0_2, %c0_3] : memref<32x1024xbf16, #tpu.memory_space<vmem>>, vector<32x1024xbf16>
    %cst = arith.constant dense<0.000000e+00> : vector<64x1024xf32>
    %3 = tpu.matmul %1, %2, %cst {dimension_numbers = #tpu.dot_dimension_numbers<[1], [0], [0], [1], [0, 0, 1, 1], [], []>} : vector<64x32xbf16>, vector<32x1024xbf16>, vector<64x1024xf32> -> vector<64x1024xf32>
    %c0_4 = arith.constant 0 : index
    %c0_5 = arith.constant 0 : index
    %4 = vector.load %arg4[%c0_4, %c0_5] : memref<1x1024xf32, #tpu.memory_space<vmem>>, vector<1x1024xf32>
    %5 = vector.broadcast %4 : vector<1x1024xf32> to vector<64x1024xf32>
    %6 = arith.addf %3, %5 : vector<64x1024xf32>
    %cst_6 = arith.constant 0.000000e+00 : f32
    %7 = vector.broadcast %cst_6 : f32 to vector<64x1024xf32>
    %8 = arith.maximumf %6, %7 : vector<64x1024xf32>
    %9 = arith.truncf %8 : vector<64x1024xf32> to vector<64x1024xbf16>
    %c0_7 = arith.constant 0 : index
    %c0_8 = arith.constant 0 : index
    %10 = vector.load %arg5[%c0_7, %c0_8] : memref<1024x256xbf16, #tpu.memory_space<vmem>>, vector<1024x256xbf16>
    %cst_9 = arith.constant dense<0.000000e+00> : vector<64x256xf32>
    %11 = tpu.matmul %9, %10, %cst_9 {dimension_numbers = #tpu.dot_dimension_numbers<[1], [0], [0], [1], [0, 0, 1, 1], [], []>} : vector<64x1024xbf16>, vector<1024x256xbf16>, vector<64x256xf32> -> vector<64x256xf32>
    %c0_10 = arith.constant 0 : index
    %c0_11 = arith.constant 0 : index
    %12 = vector.load %arg6[%c0_10, %c0_11] : memref<1x256xf32, #tpu.memory_space<vmem>>, vector<1x256xf32>
    %13 = vector.broadcast %12 : vector<1x256xf32> to vector<64x256xf32>
    %14 = arith.addf %11, %13 : vector<64x256xf32>
    %c64_i32 = arith.constant 64 : i32
    %15 = arith.muli %arg1, %c64_i32 : i32
    %16 = tpu.assume_multiple %15, 64 : i32
    %17 = vector.extract_strided_slice %14 {offsets = [0, 0], sizes = [64, 128], strides = [1, 1]} : vector<64x256xf32> to vector<64x128xf32>
    %18 = arith.index_cast %16 : i32 to index
    %c0_12 = arith.constant 0 : index
    %19 = vector.load %arg8[%18, %c0_12] : memref<64x128xf32, #tpu.memory_space<vmem>>, vector<64x128xf32>
    tpu.vector_store %arg8[%18, %c0_12], %17 {strides = array<i32>} : memref<64x128xf32, #tpu.memory_space<vmem>>, vector<64x128xf32>,
    %20 = vector.extract_strided_slice %14 {offsets = [0, 128], sizes = [64, 128], strides = [1, 1]} : vector<64x256xf32> to vector<64x128xf32>
    %21 = arith.index_cast %16 : i32 to index
    %c0_13 = arith.constant 0 : index
    %22 = vector.load %arg9[%21, %c0_13] : memref<64x128xf32, #tpu.memory_space<vmem>>, vector<64x128xf32>
    tpu.vector_store %arg9[%21, %c0_13], %20 {strides = array<i32>} : memref<64x128xf32, #tpu.memory_space<vmem>>, vector<64x128xf32>,
    %c0_i32 = arith.constant 0 : i32
    %23 = arith.cmpi eq, %arg1, %c0_i32 : i32
    %24 = arith.extui %23 : i1 to i32
    %c0_i32_14 = arith.constant 0 : i32
    %25 = arith.cmpi ne, %24, %c0_i32_14 : i32
    scf.if %25 {
      %26 = tpu.iota {dimensions = array<i32: 1>} : vector<1x128xi32>
      %c9_i32 = arith.constant 9 : i32
      %27 = vector.broadcast %c9_i32 : i32 to vector<1x128xi32>
      %28 = arith.cmpi slt, %26, %27 : vector<1x128xi32>
      %c8_i32 = arith.constant 8 : i32
      %29 = vector.broadcast %c8_i32 : i32 to vector<1x128xi32>
      %30 = arith.cmpi slt, %26, %29 : vector<1x128xi32>
      %c8_i32_15 = arith.constant 8 : i32
      %31 = vector.broadcast %c8_i32_15 : i32 to vector<1x128xi32>
      %32 = arith.cmpi eq, %26, %31 : vector<1x128xi32>
      %cst_16 = arith.constant 4.02535152 : f32
      %cst_17 = arith.constant -4.27666616 : f32
      %33 = arith.addf %cst_16, %cst_17 : f32
      %cst_18 = arith.constant -1.000000e+30 : f32
      %34 = vector.broadcast %33 : f32 to vector<1x128xf32>
      %35 = vector.broadcast %cst_18 : f32 to vector<1x128xf32>
      %36 = arith.select %32, %34, %35 : vector<1x128xi1>, vector<1x128xf32>
      %cst_19 = arith.constant -4.27666616 : f32
      %37 = vector.broadcast %cst_19 : f32 to vector<1x128xf32>
      %38 = arith.select %30, %37, %36 : vector<1x128xi1>, vector<1x128xf32>
      %c0_20 = arith.constant 0 : index
      %c0_21 = arith.constant 0 : index
      %39 = vector.load %arg9[%c0_20, %c0_21] : memref<64x128xf32, #tpu.memory_space<vmem>>, vector<64x128xf32>
      %cst_22 = arith.constant -1.000000e+30 : f32
      %40 = vector.shape_cast %28 : vector<1x128xi1> to vector<1x128xi1>
      %41 = vector.broadcast %40 : vector<1x128xi1> to vector<64x128xi1>
      %42 = vector.broadcast %cst_22 : f32 to vector<64x128xf32>
      %43 = arith.select %41, %39, %42 : vector<64x128xi1>, vector<64x128xf32>
      %cst_23 = arith.constant 1.000000e+00 : f32
      %44 = vector.broadcast %cst_23 : f32 to vector<8x64xf32>
      %cst_24 = arith.constant 0.000000e+00 : f32
      %45 = vector.broadcast %cst_24 : f32 to vector<64x1xf32>
      %46 = vector.broadcast %45 : vector<64x1xf32> to vector<64x128xf32>
      %47 = arith.addf %43, %46 : vector<64x128xf32>
      %cst_25 = arith.constant dense<0xFF800000> : vector<128xf32>
      %48 = vector.multi_reduction <maximumf>, %47, %cst_25 [0] : vector<64x128xf32> to vector<128xf32>
      %49 = vector.shape_cast %48 : vector<128xf32> to vector<1x128xf32>
      %50 = vector.broadcast %49 : vector<1x128xf32> to vector<64x128xf32>
      %51 = arith.subf %47, %50 : vector<64x128xf32>
      %52 = math.exp %51 : vector<64x128xf32>
      %cst_26 = arith.constant dense<0.000000e+00> : vector<8x128xf32>
      %53 = tpu.matmul %44, %52, %cst_26 {dimension_numbers = #tpu.dot_dimension_numbers<[1], [0], [0], [1], [0, 0, 1, 1], [], []>} : vector<8x64xf32>, vector<64x128xf32>, vector<8x128xf32> -> vector<8x128xf32>
      %54 = vector.extract_strided_slice %53 {offsets = [0, 0], sizes = [1, 128], strides = [1, 1]} : vector<8x128xf32> to vector<1x128xf32>
      %55 = math.log %54 : vector<1x128xf32>
      %56 = arith.addf %49, %55 : vector<1x128xf32>
      %57 = arith.subf %38, %56 : vector<1x128xf32>
      %cst_27 = arith.constant 0.000000e+00 : f32
      %58 = vector.broadcast %cst_27 : f32 to vector<1x128xf32>
      %59 = arith.select %28, %57, %58 : vector<1x128xi1>, vector<1x128xf32>
      %60 = vector.broadcast %59 : vector<1x128xf32> to vector<64x128xf32>
      %61 = arith.addf %43, %60 : vector<64x128xf32>
      %cst_28 = arith.constant dense<0xFF800000> : vector<64xf32>
      %62 = vector.multi_reduction <maximumf>, %61, %cst_28 [1] : vector<64x128xf32> to vector<64xf32>
      %63 = vector.shape_cast %62 : vector<64xf32> to vector<64x1xf32>
      %64 = vector.broadcast %63 : vector<64x1xf32> to vector<64x128xf32>
      %65 = arith.subf %61, %64 : vector<64x128xf32>
      %66 = math.exp %65 : vector<64x128xf32>
      %cst_29 = arith.constant dense<0.000000e+00> : vector<64xf32>
      %67 = vector.multi_reduction <add>, %66, %cst_29 [1] : vector<64x128xf32> to vector<64xf32>
      %68 = vector.shape_cast %67 : vector<64xf32> to vector<64x1xf32>
      %69 = math.log %68 : vector<64x1xf32>
      %70 = arith.addf %63, %69 : vector<64x1xf32>
      %cst_30 = arith.constant -4.27666616 : f32
      %71 = vector.broadcast %cst_30 : f32 to vector<64x1xf32>
      %72 = arith.subf %71, %70 : vector<64x1xf32>
      %73 = vector.broadcast %72 : vector<64x1xf32> to vector<64x128xf32>
      %74 = arith.addf %43, %73 : vector<64x128xf32>
      %cst_31 = arith.constant dense<0xFF800000> : vector<128xf32>
      %75 = vector.multi_reduction <maximumf>, %74, %cst_31 [0] : vector<64x128xf32> to vector<128xf32>
      %76 = vector.shape_cast %75 : vector<128xf32> to vector<1x128xf32>
      %77 = vector.broadcast %76 : vector<1x128xf32> to vector<64x128xf32>
      %78 = arith.subf %74, %77 : vector<64x128xf32>
      %79 = math.exp %78 : vector<64x128xf32>
      %cst_32 = arith.constant dense<0.000000e+00> : vector<8x128xf32>
      %80 = tpu.matmul %44, %79, %cst_32 {dimension_numbers = #tpu.dot_dimension_numbers<[1], [0], [0], [1], [0, 0, 1, 1], [], []>} : vector<8x64xf32>, vector<64x128xf32>, vector<8x128xf32> -> vector<8x128xf32>
      %81 = vector.extract_strided_slice %80 {offsets = [0, 0], sizes = [1, 128], strides = [1, 1]} : vector<8x128xf32> to vector<1x128xf32>
      %82 = math.log %81 : vector<1x128xf32>
      %83 = arith.addf %76, %82 : vector<1x128xf32>
      %84 = arith.subf %38, %83 : vector<1x128xf32>
      %cst_33 = arith.constant 0.000000e+00 : f32
      %85 = vector.broadcast %cst_33 : f32 to vector<1x128xf32>
      %86 = arith.select %28, %84, %85 : vector<1x128xi1>, vector<1x128xf32>
      %87 = vector.broadcast %86 : vector<1x128xf32> to vector<64x128xf32>
      %88 = arith.addf %43, %87 : vector<64x128xf32>
      %cst_34 = arith.constant dense<0xFF800000> : vector<64xf32>
      %89 = vector.multi_reduction <maximumf>, %88, %cst_34 [1] : vector<64x128xf32> to vector<64xf32>
      %90 = vector.shape_cast %89 : vector<64xf32> to vector<64x1xf32>
      %91 = vector.broadcast %90 : vector<64x1xf32> to vector<64x128xf32>
      %92 = arith.subf %88, %91 : vector<64x128xf32>
      %93 = math.exp %92 : vector<64x128xf32>
      %cst_35 = arith.constant dense<0.000000e+00> : vector<64xf32>
      %94 = vector.multi_reduction <add>, %93, %cst_35 [1] : vector<64x128xf32> to vector<64xf32>
      %95 = vector.shape_cast %94 : vector<64xf32> to vector<64x1xf32>
      %96 = math.log %95 : vector<64x1xf32>
      %97 = arith.addf %90, %96 : vector<64x1xf32>
      %cst_36 = arith.constant -4.27666616 : f32
      %98 = vector.broadcast %cst_36 : f32 to vector<64x1xf32>
      %99 = arith.subf %98, %97 : vector<64x1xf32>
      %100 = vector.broadcast %99 : vector<64x1xf32> to vector<64x128xf32>
      %101 = arith.addf %43, %100 : vector<64x128xf32>
      %cst_37 = arith.constant dense<0xFF800000> : vector<128xf32>
      %102 = vector.multi_reduction <maximumf>, %101, %cst_37 [0] : vector<64x128xf32> to vector<128xf32>
      %103 = vector.shape_cast %102 : vector<128xf32> to vector<1x128xf32>
      %104 = vector.broadcast %103 : vector<1x128xf32> to vector<64x128xf32>
      %105 = arith.subf %101, %104 : vector<64x128xf32>
      %106 = math.exp %105 : vector<64x128xf32>
      %cst_38 = arith.constant dense<0.000000e+00> : vector<8x128xf32>
      %107 = tpu.matmul %44, %106, %cst_38 {dimension_numbers = #tpu.dot_dimension_numbers<[1], [0], [0], [1], [0, 0, 1, 1], [], []>} : vector<8x64xf32>, vector<64x128xf32>, vector<8x128xf32> -> vector<8x128xf32>
      %108 = vector.extract_strided_slice %107 {offsets = [0, 0], sizes = [1, 128], strides = [1, 1]} : vector<8x128xf32> to vector<1x128xf32>
      %109 = math.log %108 : vector<1x128xf32>
      %110 = arith.addf %103, %109 : vector<1x128xf32>
      %111 = arith.subf %38, %110 : vector<1x128xf32>
      %cst_39 = arith.constant 0.000000e+00 : f32
      %112 = vector.broadcast %cst_39 : f32 to vector<1x128xf32>
      %113 = arith.select %28, %111, %112 : vector<1x128xi1>, vector<1x128xf32>
      %114 = vector.broadcast %113 : vector<1x128xf32> to vector<64x128xf32>
      %115 = arith.addf %43, %114 : vector<64x128xf32>
      %cst_40 = arith.constant dense<0xFF800000> : vector<64xf32>
      %116 = vector.multi_reduction <maximumf>, %115, %cst_40 [1] : vector<64x128xf32> to vector<64xf32>
      %117 = vector.shape_cast %116 : vector<64xf32> to vector<64x1xf32>
      %118 = vector.broadcast %117 : vector<64x1xf32> to vector<64x128xf32>
      %119 = arith.subf %115, %118 : vector<64x128xf32>
      %120 = math.exp %119 : vector<64x128xf32>
      %cst_41 = arith.constant dense<0.000000e+00> : vector<64xf32>
      %121 = vector.multi_reduction <add>, %120, %cst_41 [1] : vector<64x128xf32> to vector<64xf32>
      %122 = vector.shape_cast %121 : vector<64xf32> to vector<64x1xf32>
      %123 = math.log %122 : vector<64x1xf32>
      %124 = arith.addf %117, %123 : vector<64x1xf32>
      %cst_42 = arith.constant -4.27666616 : f32
      %125 = vector.broadcast %cst_42 : f32 to vector<64x1xf32>
      %126 = arith.subf %125, %124 : vector<64x1xf32>
      %127 = vector.broadcast %113 : vector<1x128xf32> to vector<64x128xf32>
      %128 = arith.addf %43, %127 : vector<64x128xf32>
      %129 = vector.broadcast %126 : vector<64x1xf32> to vector<64x128xf32>
      %130 = arith.addf %128, %129 : vector<64x128xf32>
      %cst_43 = arith.constant -4.27666616 : f32
      %131 = vector.broadcast %cst_43 : f32 to vector<64x128xf32>
      %132 = arith.subf %130, %131 : vector<64x128xf32>
      %133 = math.exp %132 : vector<64x128xf32>
      %c0_44 = arith.constant 0 : index
      %c0_45 = arith.constant 0 : index
      %134 = vector.load %arg8[%c0_44, %c0_45] : memref<64x128xf32, #tpu.memory_space<vmem>>, vector<64x128xf32>
      %cst_46 = arith.constant dense<0.000000e+00> : vector<128x128xf32>
      %135 = tpu.matmul %134, %133, %cst_46 {dimension_numbers = #tpu.dot_dimension_numbers<[0], [0], [1], [1], [0, 1, 1, 1], [], []>} : vector<64x128xf32>, vector<64x128xf32>, vector<128x128xf32> -> vector<128x128xf32>
      %136 = arith.mulf %135, %135 : vector<128x128xf32>
      %cst_47 = arith.constant dense<0.000000e+00> : vector<128xf32>
      %137 = vector.multi_reduction <add>, %136, %cst_47 [0] : vector<128x128xf32> to vector<128xf32>
      %138 = vector.shape_cast %137 : vector<128xf32> to vector<1x128xf32>
      %139 = math.sqrt %138 : vector<1x128xf32>
      %cst_48 = arith.constant 9.99999996E-13 : f32
      %140 = vector.broadcast %cst_48 : f32 to vector<1x128xf32>
      %141 = arith.maximumf %139, %140 : vector<1x128xf32>
      %142 = tpu.reciprocal %141 {approx = true} : vector<1x128xf32> -> vector<1x128xf32>
      %143 = vector.broadcast %142 : vector<1x128xf32> to vector<128x128xf32>
      %144 = arith.mulf %135, %143 : vector<128x128xf32>
      %c0_49 = arith.constant 0 : index
      %c0_50 = arith.constant 0 : index
      %c0_51 = arith.constant 0 : index
      %145 = vector.load %arg7[%c0_49, %c0_50, %c0_51] : memref<1x128x128xf32, #tpu.memory_space<vmem>>, vector<1x128x128xf32>
      %146 = vector.shape_cast %145 : vector<1x128x128xf32> to vector<128x128xf32>
      %147 = vector.shape_cast %144 : vector<128x128xf32> to vector<1x128x128xf32>
      tpu.vector_store %arg7[%c0_49, %c0_50, %c0_51], %147 {strides = array<i32>} : memref<1x128x128xf32, #tpu.memory_space<vmem>>, vector<1x128x128xf32>,
    } else {
    }
    return
  }
  func.func @transform_0(%arg0: i32, %arg1: i32) -> (i32, i32, i32) {
    %c0_i32 = arith.constant 0 : i32
    %c0_i32_0 = arith.constant 0 : i32
    return %arg0, %arg1, %c0_i32 : i32, i32, i32
  }
  func.func @transform_1(%arg0: i32, %arg1: i32) -> (i32, i32) {
    %c0_i32 = arith.constant 0 : i32
    %c0_i32_0 = arith.constant 0 : i32
    %c0_i32_1 = arith.constant 0 : i32
    return %c0_i32, %c0_i32_0 : i32, i32
  }
  func.func @transform_2(%arg0: i32, %arg1: i32) -> (i32, i32) {
    %c0_i32 = arith.constant 0 : i32
    %c0_i32_0 = arith.constant 0 : i32
    %c0_i32_1 = arith.constant 0 : i32
    return %c0_i32, %c0_i32_0 : i32, i32
  }
  func.func @transform_3(%arg0: i32, %arg1: i32) -> (i32, i32) {
    %c0_i32 = arith.constant 0 : i32
    %c0_i32_0 = arith.constant 0 : i32
    %c0_i32_1 = arith.constant 0 : i32
    return %c0_i32, %c0_i32_0 : i32, i32
  }
  func.func @transform_4(%arg0: i32, %arg1: i32) -> (i32, i32) {
    %c0_i32 = arith.constant 0 : i32
    %c0_i32_0 = arith.constant 0 : i32
    %c0_i32_1 = arith.constant 0 : i32
    return %c0_i32, %c0_i32_0 : i32, i32
  }
  func.func @transform_5(%arg0: i32, %arg1: i32) -> (i32, i32, i32) {
    %c0_i32 = arith.constant 0 : i32
    %c0_i32_0 = arith.constant 0 : i32
    %c0_i32_1 = arith.constant 0 : i32
    return %arg0, %c0_i32, %c0_i32_0 : i32, i32, i32
  }
}

</mosaic_0001>

<bundles_post_ra>
// kernel: salad_forward.1
= control target key start
LH: loop header
LB: loop body
LE: loop exit
PB: predicated region body
PF: predicated region fallthrough
CT: control target
= control target key end

     0   :  { %s3949_s18 = smov 0   ;;  %s3951_s19 = smov 0   ;;  %s4984_s0 = inlined_call_operand.vmem [shape: bf16[2,64,32], index: 0, kind: input, shape index: {}]   ;;  %s4985_s1 = inlined_call_operand.vmem [shape: bf16[32,1024], index: 1, kind: input, shape index: {}]   ;;  %s4986_s2 = inlined_call_operand.vmem [shape: f32[1,1024], index: 2, kind: input, shape index: {}]   ;;  %s4987_s3 = inlined_call_operand.vmem [shape: bf16[1024,256], index: 3, kind: input, shape index: {}]   ;;  %s4988_s4 = inlined_call_operand.vmem [shape: f32[1,256], index: 4, kind: input, shape index: {}]   ;;  %s4989_s5 = inlined_call_operand.vmem [shape: f32[2,128,128], index: 5, kind: output, shape index: {}]  }
   0x1   :  { %s3953_s20 = smov 0  }
   0x2 LB: > { %s27_s21 = sadd.s32 1, %s3907_s19  ;;  %p3025_p0 = scmp.ge.s32.totalorder %s3911_s20, 1  ;;  %s3911_s20 = sphi %s3953_s20, %s15_s20   ;;  %s3907_s19 = sphi %s3951_s19, %s4991_s19   ;;  %s3903_s18 = sphi %s3949_s18, %s4990_s18  }
   0x3   : > { %p29_p1 = scmp.ge.s32.totalorder %s27_s21, 2  ;;  %p206_p2 = scmp.lt.s32.totalorder %s3911_s20, 3 }
   0x5   : > { %s4993_s21 = smov (%p29_p1, %s27_s21), 0  ;;  %p207_p3 = pnand %p3025_p0, %p206_p2 }
   0x6   : > { %v262_v0 = vld [vmem:[%s4985_s1] sm:$0xff] (!%p207_p3)  ;;  %p239_p4 = scmp.lt.s32.totalorder (!%p207_p3), %s3903_s18, 1  ;;  %v3913_v6 = vmov (!%p207_p3), 0   ;;  %v263_v8 = vld [vmem:[%s4985_s1 + $0x8] sm:$0xff] (!%p207_p3)  ;;  %v264_v10 = vld [vmem:[%s4985_s1 + $0x10] sm:$0xff] (!%p207_p3)  ;;  %vm420_vm0 = vcmask (!%p207_p3), 261120  }
   0x7   : > { %210 = sbr.rel (%p207_p3) target bundleno = 2828 (0xb0c), region = 40  ;;  %v266_v1 = vld [vmem:[%s4985_s1 + $0x20] sm:$0xff] (!%p207_p3)  ;;  %465 = vmatprep.mubr.bf16.mxu0 (!%p207_p3), %v3913_v6  ;;  %475 = vmatprep.mubr.bf16.mxu1 (!%p207_p3), %v3913_v6  ;;  %v267_v9 = vld [vmem:[%s4985_s1 + $0x28] sm:$0xff] (!%p207_p3)  ;;  %v268_v11 = vld [vmem:[%s4985_s1 + $0x30] sm:$0xff] (!%p207_p3)  ;;  %vm3915_vm1 = vmmov (!%p207_p3), 0   ;;  %vm1986_vm3 = vcmask (!%p207_p3), 523264  }
   0x8   : > { %v270_v2 = vld [vmem:[%s4985_s1 + $0x40] sm:$0xff] (!%p207_p3)  ;;  %v3035_v3 = vcombine.high (!%p207_p3), %v262_v0, %v266_v1  ;;  %v3034_v4 = vcombine.low (!%p207_p3), %v262_v0, %v266_v1  ;;  %v271_v13 = vld [vmem:[%s4985_s1 + $0x48] sm:$0xff] (!%p207_p3)  ;;  %v3037_v15 = vcombine.high (!%p207_p3), %v263_v8, %v267_v9  ;;  %v3039_v16 = vcombine.high (!%p207_p3), %v264_v10, %v268_v11  ;;  %v272_v17 = vld [vmem:[%s4985_s1 + $0x50] sm:$0xff] (!%p207_p3) }
   0x9   : > { %v274_v5 = vld [vmem:[%s4985_s1 + $0x60] sm:$0xff] (!%p207_p3)  ;;  %v275_v14 = vld [vmem:[%s4985_s1 + $0x68] sm:$0xff] (!%p207_p3)  ;;  %v276_v18 = vld [vmem:[%s4985_s1 + $0x70] sm:$0xff] (!%p207_p3)  ;;  %v3036_v21 = vcombine.low (!%p207_p3), %v263_v8, %v267_v9  ;;  %v3038_v23 = vcombine.low (!%p207_p3), %v264_v10, %v268_v11 }
   0xa   : > { %v3043_v7 = vcombine.high (!%p207_p3), %v270_v2, %v274_v5  ;;  %433 = vmatprep.subr.bf16.mxu0 (!%p207_p3), %v3035_v3  ;;  %3425 = vmatprep.subr.bf16.mxu1 (!%p207_p3), %v3035_v3  ;;  %v3042_v12 = vcombine.low (!%p207_p3), %v270_v2, %v274_v5  ;;  %v3045_v22 = vcombine.high (!%p207_p3), %v271_v13, %v275_v14  ;;  %v265_v25 = vld [vmem:[%s4985_s1 + $0x18] sm:$0xff] (!%p207_p3)  ;;  %v3545_v31 = vld [vmem:[%s4987_s3 + $0x100] ss:$8 sps:$4 sm:$0xff] (!%p207_p3)   ;;  %v3547_v32 = vld [vmem:[%s4987_s3 + $0x104] ss:$8 sps:$4 sm:$0xff] (!%p207_p3)  }
   0xb   : > { %434 = vmatpush1.bf16.msra.mxu0 (!%p207_p3), %v3034_v4  ;;  %3427 = vmatpush1.bf16.msra.mxu1 (!%p207_p3), %v3034_v4  ;;  %v3047_v24 = vcombine.high (!%p207_p3), %v272_v17, %v276_v18  ;;  %v269_v26 = vld [vmem:[%s4985_s1 + $0x38] sm:$0xff] (!%p207_p3)  ;;  %v3044_v27 = vcombine.low (!%p207_p3), %v271_v13, %v275_v14  ;;  %v3046_v28 = vcombine.low (!%p207_p3), %v272_v17, %v276_v18  ;;  %v3559_v36 = vld [vmem:[%s4987_s3 + $0x124] ss:$8 sps:$4 sm:$0xff] (!%p207_p3)   ;;  %v3557_v37 = vld [vmem:[%s4987_s3 + $0x120] ss:$8 sps:$4 sm:$0xff] (!%p207_p3)  }
   0xc   : > { %435 = vmatprep.subr.bf16.mxu0 (!%p207_p3), %v3043_v7  ;;  %3426 = vmatprep.subr.bf16.mxu1 (!%p207_p3), %v3043_v7  ;;  %v3041_v29 = vcombine.high (!%p207_p3), %v265_v25, %v269_v26  ;;  %v3553_v33 = vld [vmem:[%s4987_s3 + $0x114] ss:$8 sps:$4 sm:$0xff] (!%p207_p3)   ;;  %v3551_v34 = vld [vmem:[%s4987_s3 + $0x110] ss:$8 sps:$4 sm:$0xff] (!%p207_p3)   ;;  %v3571_v42 = vld [vmem:[%s4987_s3 + $0x144] ss:$8 sps:$4 sm:$0xff] (!%p207_p3)   ;;  %v3040_v43 = vcombine.low (!%p207_p3), %v265_v25, %v269_v26 }
   0xd   : > { %v3565_v38 = vld [vmem:[%s4987_s3 + $0x134] ss:$8 sps:$4 sm:$0xff] (!%p207_p3)   ;;  %v3563_v40 = vld [vmem:[%s4987_s3 + $0x130] ss:$8 sps:$4 sm:$0xff] (!%p207_p3)   ;;  %v3569_v45 = vld [vmem:[%s4987_s3 + $0x140] ss:$8 sps:$4 sm:$0xff] (!%p207_p3)  }
   0xe   : > { %s4995_s18 = smov (!%p239_p4, %s3903_s18), 1  ;;  %v273_v39 = vld [vmem:[%s4985_s1 + $0x58] sm:$0xff]  ;;  %v3529_v48 = vld [vmem:[%s4987_s3 + $0x4] ss:$8 sps:$4 sm:$0xff]   ;;  %v3581_v51 = vld [vmem:[%s4987_s3 + $0x160] ss:$8 sps:$4 sm:$0xff]  }
   0xf   : > { %s3223_s13 = sshll.u32 %s4995_s18, 5  ;;  %436 = vmatpush1.bf16.msra.mxu0 %v3042_v12  ;;  %3428 = vmatpush1.bf16.msra.mxu1 %v3042_v12  ;;  %v277_v41 = vld [vmem:[%s4985_s1 + $0x78] sm:$0xff]  ;;  %v3583_v50 = vld [vmem:[%s4987_s3 + $0x164] ss:$8 sps:$4 sm:$0xff]   ;;  %v3527_v54 = vld [vmem:[%s4987_s3] ss:$8 sps:$4 sm:$0xff]  }
  0x10   : > { %s4005_s24 = scalar_lea.vmem %s4984_s0, %s3223_s13  ;;  %506 = vmatprep.subr.bf16.mxu1 %v3037_v15  ;;  %579 = vmatprep.subr.bf16.mxu0 %v3039_v16  ;;  %v3049_v44 = vcombine.high %v273_v39, %v277_v41  ;;  %v3577_v46 = vld [vmem:[%s4987_s3 + $0x154] ss:$8 sps:$4 sm:$0xff]   ;;  %v3048_v47 = vcombine.low %v273_v39, %v277_v41  ;;  %v3575_v49 = vld [vmem:[%s4987_s3 + $0x150] ss:$8 sps:$4 sm:$0xff]   ;;  %v3535_v57 = vld [vmem:[%s4987_s3 + $0x24] ss:$8 sps:$4 sm:$0xff]  }
  0x11   : > { %v4014_v19 = vld [vmem:[%s4005_s24] sm:$0xff]   ;;  %v4017_v20 = vld [vmem:[%s4005_s24 + $0x8] sm:$0xff]   ;;  %v4032_v30 = vld [vmem:[%s4005_s24 + $0x10] sm:$0xff]   ;;  %s3224_s25 = sshll.u32 %s4995_s18, 7 }
  0x12   : > { %3050 = vmatmul.mubr.msk.bf16.vlgmr.msra.gmra.mrb[0].mxu0 %vm420_vm0, %v4014_v19  ;;  %3051 = vmatmul.mubr.msk.bf16.vlgmr.msra.gmra.mrb[0].mxu1 %vm420_vm0, %v4017_v20  ;;  %v4053_v35 = vld [vmem:[%s4005_s24 + $0x18] sm:$0xff]   ;;  %v3533_v58 = vld [vmem:[%s4987_s3 + $0x20] ss:$8 sps:$4 sm:$0xff]   ;;  %v3541_v61 = vld [vmem:[%s4987_s3 + $0x44] ss:$8 sps:$4 sm:$0xff]   ;;  %s4954_s27 = scalar_lea.vmem %s4989_s5, %s3224_s25 }
  0x13   : > { %485 = vmatprep.mubr.bf16.mxu1 %v3913_v6  ;;  %507 = vmatpush1.bf16.msra.mxu1 %v3036_v21  ;;  %v3589_v52 = vld [vmem:[%s4987_s3 + $0x174] ss:$8 sps:$4 sm:$0xff]   ;;  %v3587_v53 = vld [vmem:[%s4987_s3 + $0x170] ss:$8 sps:$4 sm:$0xff]   ;;  %v3539_v62 = vld [vmem:[%s4987_s3 + $0x40] ss:$8 sps:$4 sm:$0xff]  }
  0x14   : > { %508 = vmatprep.subr.bf16.mxu1 %v3045_v22  ;;  %580 = vmatpush1.bf16.msra.mxu0 %v3038_v23  ;;  %v3532_v55 = vld [vmem:[%s4987_s3 + $0x14] ss:$8 sps:$4 sm:$0xff]   ;;  %v3530_v56 = vld [vmem:[%s4987_s3 + $0x10] ss:$8 sps:$4 sm:$0xff]   ;;  %v3550_v1 = vld [vmem:[%s4987_s3 + $0x64] ss:$8 sps:$4 sm:$0xff]  }
  0x15   : > { %581 = vmatprep.subr.bf16.mxu0 %v3047_v24  ;;  %611 = vmatprep.mubr.bf16.mxu0 %v3913_v6  ;;  %v3538_v59 = vld [vmem:[%s4987_s3 + $0x34] ss:$8 sps:$4 sm:$0xff]   ;;  %v3536_v60 = vld [vmem:[%s4987_s3 + $0x30] ss:$8 sps:$4 sm:$0xff]   ;;  %v3548_v2 = vld [vmem:[%s4987_s3 + $0x60] ss:$8 sps:$4 sm:$0xff]  }
  0x16   : > { %v3544_v63 = vld [vmem:[%s4987_s3 + $0x54] ss:$8 sps:$4 sm:$0xff]   ;;  %v3542_v0 = vld [vmem:[%s4987_s3 + $0x50] ss:$8 sps:$4 sm:$0xff]   ;;  %v3562_v5 = vld [vmem:[%s4987_s3 + $0x84] ss:$8 sps:$4 sm:$0xff]  }
  0x17   : > { %509 = vmatpush1.bf16.msra.mxu1 %v3044_v27  ;;  %v3556_v3 = vld [vmem:[%s4987_s3 + $0x74] ss:$8 sps:$4 sm:$0xff]   ;;  %v3554_v4 = vld [vmem:[%s4987_s3 + $0x70] ss:$8 sps:$4 sm:$0xff]   ;;  %v3593_v7 = vld [vmem:[%s4987_s3 + $0x180] ss:$8 sps:$4 sm:$0xff]  }
  0x18   : > { %582 = vmatpush1.bf16.msra.mxu0 %v3046_v28  ;;  %652 = vmatprep.subr.bf16.mxu1 %v3041_v29  ;;  %v3560_v8 = vld [vmem:[%s4987_s3 + $0x80] ss:$8 sps:$4 sm:$0xff]   ;;  %v3568_v9 = vld [vmem:[%s4987_s3 + $0x94] ss:$8 sps:$4 sm:$0xff]   ;;  %v3599_v11 = vld [vmem:[%s4987_s3 + $0x190] ss:$8 sps:$4 sm:$0xff]  }
  0x19   : > { %1674 = vmatprep.subr.bf16.mxu0 %v3547_v32  ;;  %v3601_v10 = vld [vmem:[%s4987_s3 + $0x194] ss:$8 sps:$4 sm:$0xff]   ;;  %v3566_v12 = vld [vmem:[%s4987_s3 + $0x90] ss:$8 sps:$4 sm:$0xff]   ;;  %v3574_v13 = vld [vmem:[%s4987_s3 + $0xa4] ss:$8 sps:$4 sm:$0xff]  }
  0x1a   : > { %3052 = vmatmul.mubr.msk.bf16.gmra.mrb[4].mxu1 %vm420_vm0, %v4032_v30  ;;  %v3607_v14 = vld [vmem:[%s4987_s3 + $0x1a4] ss:$8 sps:$4 sm:$0xff]   ;;  %v3605_v15 = vld [vmem:[%s4987_s3 + $0x1a0] ss:$8 sps:$4 sm:$0xff]   ;;  %v3580_v17 = vld [vmem:[%s4987_s3 + $0xb4] ss:$8 sps:$4 sm:$0xff]  }
  0x1b   : > { %495 = vmatprep.mubr.bf16.mxu1 %v3913_v6  ;;  %3058 = vmatmul.mubr.msk.bf16.vlgmr.msra.gmra.mrb[4].mxu0 %vm420_vm0, %v4014_v19  ;;  %v3572_v16 = vld [vmem:[%s4987_s3 + $0xa0] ss:$8 sps:$4 sm:$0xff]   ;;  %v3610_v18 = vld [vmem:[%s4987_s3 + $0x1b4] ss:$8 sps:$4 sm:$0xff]   ;;  %v3586_v21 = vld [vmem:[%s4987_s3 + $0xc4] ss:$8 sps:$4 sm:$0xff]  }
  0x1c   : > { %621 = vmatprep.mubr.bf16.mxu0 %v3913_v6  ;;  %1675 = vmatpush1.bf16.msra.mxu0 %v3545_v31  ;;  %v3613_v22 = vld [vmem:[%s4987_s3 + $0x1c4] ss:$8 sps:$4 sm:$0xff]   ;;  %v3611_v23 = vld [vmem:[%s4987_s3 + $0x1c0] ss:$8 sps:$4 sm:$0xff]   ;;  %v3592_v25 = vld [vmem:[%s4987_s3 + $0xd4] ss:$8 sps:$4 sm:$0xff]  }
  0x1d   : > { %1676 = vmatprep.subr.bf16.mxu0 %v3553_v33  ;;  %v3584_v24 = vld [vmem:[%s4987_s3 + $0xc0] ss:$8 sps:$4 sm:$0xff]   ;;  %v3616_v26 = vld [vmem:[%s4987_s3 + $0x1d4] ss:$8 sps:$4 sm:$0xff]   ;;  %v3614_v27 = vld [vmem:[%s4987_s3 + $0x1d0] ss:$8 sps:$4 sm:$0xff]  }
  0x1e   : > { %v3590_v28 = vld [vmem:[%s4987_s3 + $0xd0] ss:$8 sps:$4 sm:$0xff]   ;;  %v3598_v29 = vld [vmem:[%s4987_s3 + $0xe4] ss:$8 sps:$4 sm:$0xff]   ;;  %v3617_v31 = vld [vmem:[%s4987_s3 + $0x1e0] ss:$8 sps:$4 sm:$0xff]  }
  0x1f   : > { %v3596_v32 = vld [vmem:[%s4987_s3 + $0xe0] ss:$8 sps:$4 sm:$0xff]   ;;  %v3604_v33 = vld [vmem:[%s4987_s3 + $0xf4] ss:$8 sps:$4 sm:$0xff]  }
  0x20   : > { %1677 = vmatpush1.bf16.msra.mxu0 %v3551_v34  ;;  %v3622_v34 = vld [vmem:[%s4987_s3 + $0x1f4] ss:$8 sps:$4 sm:$0xff]   ;;  %v4287_v41 = vld [vmem:[%s4986_s2] sm:$0xff] }
  0x21   : > { %1678 = vmatprep.subr.bf16.mxu0 %v3559_v36  ;;  %v3602_v36 = vld [vmem:[%s4987_s3 + $0xf0] ss:$8 sps:$4 sm:$0xff]  }
  0x22   : > { %3053 = vmatmul.mubr.msk.bf16.gmra.mrb[8].mxu1 %vm420_vm0, %v4053_v35 }
  0x23   : > { %538 = vmatprep.mubr.bf16.mxu1 %v3913_v6  ;;  %3059 = vmatmul.mubr.msk.bf16.gmra.mrb[8].mxu0 %vm420_vm0, %v4017_v20 }
  0x24   : > { %631 = vmatprep.mubr.bf16.mxu0 %v3913_v6  ;;  %1679 = vmatpush1.bf16.msra.mxu0 %v3557_v37  ;;  %v3625_v37 = vld [vmem:[%s4987_s3 + $0x204] ss:$8 sps:$4 sm:$0xff]  }
  0x25   : > { %1680 = vmatprep.subr.bf16.mxu0 %v3565_v38  ;;  %v280_v38 = vlaneseq }
  0x27   : > { %v4279_v39 = vshrl.u32 %v280_v38, 7 }
  0x28   : > { %1681 = vmatpush1.bf16.msra.mxu0 %v3563_v40 }
  0x29   : > { %1682 = vmatprep.subr.bf16.mxu0 %v3571_v42  ;;  %v4282_v40 = vsub.s32 0, %v4279_v39  ;;  %v286_v42 = vsub.s32 1, %v4279_v39 }
  0x2a   : > { %3054 = vmatmul.mubr.msk.bf16.vlgmr.msra.gmra.mrb[12].mxu1 %vm420_vm0, %v4014_v19 }
  0x2b   : > { %548 = vmatprep.mubr.bf16.mxu1 %v3913_v6  ;;  %3060 = vmatmul.mubr.msk.bf16.gmra.mrb[12].mxu0 %vm420_vm0, %v4032_v30 }
  0x2c   : > { %653 = vmatpush1.bf16.msra.mxu1 %v3040_v43  ;;  %641 = vmatprep.mubr.bf16.mxu0 %v3913_v6  ;;  %v4292_v43 = vrot.slane %v4287_v41, %v4282_v40 }
  0x2d   : > { %654 = vmatprep.subr.bf16.mxu1 %v3049_v44  ;;  %1683 = vmatpush1.bf16.msra.mxu0 %v3569_v45  ;;  %v4297_v44 = vrot.slane %v4287_v41, %v286_v42 }
  0x2e   : > { %1684 = vmatprep.subr.bf16.mxu0 %v3577_v46 }
  0x30   : > { %655 = vmatpush1.bf16.msra.mxu1 %v3048_v47 }
  0x31   : > { %1601 = vmatprep.subr.bf16.mxu1 %v3529_v48  ;;  %1685 = vmatpush1.bf16.msra.mxu0 %v3575_v49 }
  0x32   : > { %3055 = vmatmul.mubr.msk.bf16.gmra.mrb[16].mxu1 %vm420_vm0, %v4017_v20  ;;  %1686 = vmatprep.subr.bf16.mxu0 %v3583_v50 }
  0x33   : > { %558 = vmatprep.mubr.bf16.mxu1 %v3913_v6  ;;  %3061 = vmatmul.mubr.msk.bf16.gmra.mrb[16].mxu0 %vm420_vm0, %v4053_v35 }
  0x35   : > { %1687 = vmatpush1.bf16.msra.mxu0 %v3581_v51 }
  0x36   : > { %1688 = vmatprep.subr.bf16.mxu0 %v3589_v52 }
  0x39   : > { %1689 = vmatpush1.bf16.msra.mxu0 %v3587_v53 }
  0x3a   : > { %3056 = vmatmul.mubr.msk.bf16.gmra.mrb[20].mxu1 %vm420_vm0, %v4032_v30 }
  0x3b   : > { %568 = vmatprep.mubr.bf16.mxu1 %v3913_v6 }
  0x42   : > { %3057 = vmatmul.mubr.msk.bf16.gmra.mrb[24].mxu1 %vm420_vm0, %v4053_v35 }
  0x43   : > { %684 = vmatprep.mubr.bf16.mxu1 %v3913_v6 }
  0x4a   : > { %3062 = vmatmul.mubr.msk.bf16.vlgmr.msra.gmra.mrb[28].mxu1 %vm420_vm0, %v4014_v19  ;;  %v3608_v19 = vld [vmem:[%s4987_s3 + $0x1b0] ss:$8 sps:$4 sm:$0xff]  }
  0x4b   : > { %694 = vmatprep.mubr.bf16.mxu1 %v3913_v6  ;;  %1602 = vmatpush1.bf16.msra.mxu1 %v3527_v54 }
  0x4c   : > { %1603 = vmatprep.subr.bf16.mxu1 %v3532_v55  ;;  %v298_v55 = vsub.s32 4, %v4279_v39 }
  0x4f   : > { %1604 = vmatpush1.bf16.msra.mxu1 %v3530_v56 }
  0x50   : > { %1605 = vmatprep.subr.bf16.mxu1 %v3535_v57 }
  0x52   : > { %3063 = vmatmul.mubr.msk.bf16.gmra.mrb[32].mxu1 %vm420_vm0, %v4017_v20  ;;  %v3578_v20 = vld [vmem:[%s4987_s3 + $0xb0] ss:$8 sps:$4 sm:$0xff]  }
  0x53   : > { %704 = vmatprep.mubr.bf16.mxu1 %v3913_v6  ;;  %1606 = vmatpush1.bf16.msra.mxu1 %v3533_v58 }
  0x54   : > { %1607 = vmatprep.subr.bf16.mxu1 %v3538_v59 }
  0x57   : > { %1608 = vmatpush1.bf16.msra.mxu1 %v3536_v60 }
  0x58   : > { %1609 = vmatprep.subr.bf16.mxu1 %v3541_v61  ;;  %v302_v61 = vsub.s32 5, %v4279_v39 }
  0x5a   : > { %3064 = vmatmul.mubr.msk.bf16.gmra.mrb[36].mxu1 %vm420_vm0, %v4032_v30  ;;  %v3619_v30 = vld [vmem:[%s4987_s3 + $0x1e4] ss:$8 sps:$4 sm:$0xff]  }
  0x5b   : > { %714 = vmatprep.mubr.bf16.mxu1 %v3913_v6  ;;  %1610 = vmatpush1.bf16.msra.mxu1 %v3539_v62  ;;  %v3595_v6 = vld [vmem:[%s4987_s3 + $0x184] ss:$8 sps:$4 sm:$0xff]  }
  0x5c   : > { %1611 = vmatprep.subr.bf16.mxu1 %v3544_v63  ;;  %1690 = vmatprep.subr.bf16.mxu0 %v3595_v6 }
  0x5d   : > { %1691 = vmatpush1.bf16.msra.mxu0 %v3593_v7  ;;  %v4310_v7 = vrot.slane %v4287_v41, %v298_v55  ;;  %v294_v55 = vsub.s32 3, %v4279_v39 }
  0x5e   : > { %1692 = vmatprep.subr.bf16.mxu0 %v3601_v10  ;;  %v4313_v10 = vrot.slane %v4287_v41, %v302_v61 }
  0x5f   : > { %1612 = vmatpush1.bf16.msra.mxu1 %v3542_v0 }
  0x60   : > { %1613 = vmatprep.subr.bf16.mxu1 %v3550_v1 }
  0x61   : > { %1693 = vmatpush1.bf16.msra.mxu0 %v3599_v11 }
  0x62   : > { %3065 = vmatmul.mubr.msk.bf16.gmra.mrb[40].mxu1 %vm420_vm0, %v4053_v35  ;;  %1694 = vmatprep.subr.bf16.mxu0 %v3607_v14  ;;  %v3620_v35 = vld [vmem:[%s4987_s3 + $0x1f0] ss:$8 sps:$4 sm:$0xff]  }
  0x63   : > { %1614 = vmatpush1.bf16.msra.mxu1 %v3548_v2 }
  0x64   : > { %1615 = vmatprep.subr.bf16.mxu1 %v3556_v3 }
  0x65   : > { %1695 = vmatpush1.bf16.msra.mxu0 %v3605_v15 }
  0x66   : > { %1696 = vmatprep.subr.bf16.mxu0 %v3610_v18 }
  0x67   : > { %1616 = vmatpush1.bf16.msra.mxu1 %v3554_v4 }
  0x68   : > { %1617 = vmatprep.subr.bf16.mxu1 %v3562_v5 }
  0x69   : > { %1697 = vmatpush1.bf16.msra.mxu0 %v3608_v19 }
  0x6a   : > { %1698 = vmatprep.subr.bf16.mxu0 %v3613_v22 }
  0x6b   : > { %1618 = vmatpush1.bf16.msra.mxu1 %v3560_v8 }
  0x6c   : > { %1619 = vmatprep.subr.bf16.mxu1 %v3568_v9 }
  0x6d   : > { %1699 = vmatpush1.bf16.msra.mxu0 %v3611_v23 }
  0x6e   : > { %1700 = vmatprep.subr.bf16.mxu0 %v3616_v26 }
  0x6f   : > { %1620 = vmatpush1.bf16.msra.mxu1 %v3566_v12 }
  0x70   : > { %1621 = vmatprep.subr.bf16.mxu1 %v3574_v13 }
  0x71   : > { %1701 = vmatpush1.bf16.msra.mxu0 %v3614_v27 }
  0x72   : > { %1702 = vmatprep.subr.bf16.mxu0 %v3619_v30 }
  0x73   : > { %1622 = vmatpush1.bf16.msra.mxu1 %v3572_v16 }
  0x74   : > { %1623 = vmatprep.subr.bf16.mxu1 %v3580_v17 }
  0x75   : > { %1703 = vmatpush1.bf16.msra.mxu0 %v3617_v31 }
  0x76   : > { %1704 = vmatprep.subr.bf16.mxu0 %v3622_v34 }
  0x77   : > { %1624 = vmatpush1.bf16.msra.mxu1 %v3578_v20 }
  0x78   : > { %1625 = vmatprep.subr.bf16.mxu1 %v3586_v21 }
  0x79   : > { %1705 = vmatpush1.bf16.msra.mxu0 %v3620_v35 }
  0x7a   : > { %1747 = vmatprep.subr.bf16.mxu0 %v3625_v37 }
  0x7b   : > { %1626 = vmatpush1.bf16.msra.mxu1 %v3584_v24 }
  0x7c   : > { %1627 = vmatprep.subr.bf16.mxu1 %v3592_v25 }
  0x7f   : > { %1628 = vmatpush1.bf16.msra.mxu1 %v3590_v28 }
  0x80   : > { %1629 = vmatprep.subr.bf16.mxu1 %v3598_v29 }
  0x83   : > { %1630 = vmatpush1.bf16.msra.mxu1 %v3596_v32 }
  0x84   : > { %1631 = vmatprep.subr.bf16.mxu1 %v3604_v33 }
  0x87   : > { %1632 = vmatpush1.bf16.msra.mxu1 %v3602_v36 }
  0xe5   : > { %v467_v45 = vpop.f32.mrb[0].mxu0  ;;  %v477_v46 = vpop.f32.mrb[0].mxu1 }
  0xe6   : > { %v468_v47 = vadd.f32 %v467_v45, %v4292_v43  ;;  %v478_v48 = vadd.f32 %v477_v46, %v4292_v43  ;;  %v469_v49 = vpop.f32.mrb[1].mxu0  ;;  %v479_v50 = vpop.f32.mrb[1].mxu1 }
  0xe7   : > { %v470_v51 = vadd.f32 %v469_v49, %v4297_v44  ;;  %v480_v52 = vadd.f32 %v479_v50, %v4297_v44  ;;  %v471_v53 = vpop.f32.mrb[2].mxu0  ;;  %v481_v54 = vpop.f32.mrb[2].mxu1 }
  0xe8   : > { %v725_v56 = vmax.f32 %v468_v47, 0.0  ;;  %v472_v57 = vadd.f32 %v471_v53, %v4292_v43  ;;  %v482_v58 = vadd.f32 %v481_v54, %v4292_v43  ;;  %v473_v59 = vpop.f32.mrb[3].mxu0  ;;  %v483_v60 = vpop.f32.mrb[3].mxu1  ;;  %v741_v1 = vmax.f32 %v478_v48, 0.0 }
  0xe9   : > { %v726_v62 = vmax.f32 %v470_v51, 0.0  ;;  %v474_v63 = vadd.f32 %v473_v59, %v4297_v44  ;;  %v484_v0 = vadd.f32 %v483_v60, %v4297_v44  ;;  %v742_v4 = vmax.f32 %v480_v52, 0.0 }
  0xea   : > { %v733_v2 = vmax.f32 %v472_v57, 0.0  ;;  %v749_v3 = vmax.f32 %v482_v58, 0.0  ;;  %v290_v47 = vsub.s32 2, %v4279_v39 }
  0xeb   : > { %v734_v5 = vmax.f32 %v474_v63, 0.0  ;;  %v750_v6 = vmax.f32 %v484_v0, 0.0 }
  0xec   : > { %v789_v8 = vpack.c.bf16 %v733_v2, %v725_v56  ;;  %v797_v9 = vpack.c.bf16 %v749_v3, %v741_v1  ;;  %v4336_v63 = vrot.slane %v4287_v41, %v290_v47 }
  0xed   : > { %v790_v11 = vpack.c.bf16 %v734_v5, %v726_v62  ;;  %v798_v12 = vpack.c.bf16 %v750_v6, %v742_v4  ;;  %v487_v13 = vpop.f32.mrb[4].mxu1 }
  0xee   : > { %v488_v14 = vadd.f32 %v487_v13, %v4292_v43  ;;  %v489_v15 = vpop.f32.mrb[5].mxu1  ;;  %v613_v16 = vpop.f32.mrb[4].mxu0 }
  0xef   : > { %v490_v17 = vadd.f32 %v489_v15, %v4297_v44  ;;  %v491_v18 = vpop.f32.mrb[6].mxu1  ;;  %1633 = vmatprep.mubr.bf16.mxu1 %v790_v11  ;;  %v614_v19 = vadd.f32 %v613_v16, %v4310_v7  ;;  %v615_v20 = vpop.f32.mrb[5].mxu0 }
  0xf0   : > { %v492_v21 = vadd.f32 %v491_v18, %v4292_v43  ;;  %v493_v22 = vpop.f32.mrb[7].mxu1  ;;  %1634 = vmatmul.mubr.bf16.vlgmr.msra.gmra.mrb[44].mxu1 %v789_v8  ;;  %v616_v23 = vadd.f32 %v615_v20, %v4313_v10  ;;  %v617_v24 = vpop.f32.mrb[6].mxu0  ;;  %v757_v29 = vmax.f32 %v488_v14, 0.0 }
  0xf1   : > { %v494_v25 = vadd.f32 %v493_v22, %v4297_v44  ;;  %1643 = vmatprep.mubr.bf16.mxu1 %v798_v12  ;;  %v729_v26 = vmax.f32 %v614_v19, 0.0  ;;  %v618_v27 = vadd.f32 %v617_v24, %v4310_v7  ;;  %v619_v28 = vpop.f32.mrb[7].mxu0  ;;  %v758_v33 = vmax.f32 %v490_v17, 0.0 }
  0xf2   : > { %v765_v30 = vmax.f32 %v492_v21, 0.0  ;;  %v730_v31 = vmax.f32 %v616_v23, 0.0  ;;  %v620_v32 = vadd.f32 %v619_v28, %v4313_v10 }
  0xf3   : > { %v766_v34 = vmax.f32 %v494_v25, 0.0  ;;  %v737_v35 = vmax.f32 %v618_v27, 0.0 }
  0xf4   : > { %v805_v36 = vpack.c.bf16 %v765_v30, %v757_v29  ;;  %v738_v37 = vmax.f32 %v620_v32, 0.0 }
  0xf5   : > { %v806_v45 = vpack.c.bf16 %v766_v34, %v758_v33  ;;  %v497_v46 = vpop.f32.mrb[8].mxu1  ;;  %v4324_v48 = vpack.c.bf16 %v737_v35, %v729_v26 }
  0xf6   : > { %v498_v49 = vadd.f32 %v497_v46, %v4292_v43  ;;  %v499_v50 = vpop.f32.mrb[9].mxu1  ;;  %v4327_v51 = vpack.c.bf16 %v738_v37, %v730_v31  ;;  %v623_v52 = vpop.f32.mrb[8].mxu0 }
  0xf7   : > { %v500_v53 = vadd.f32 %v499_v50, %v4297_v44  ;;  %v501_v54 = vpop.f32.mrb[10].mxu1  ;;  %v624_v56 = vadd.f32 %v623_v52, %v4310_v7  ;;  %v625_v57 = vpop.f32.mrb[9].mxu0  ;;  %v3623_v50 = vld [vmem:[%s4987_s3 + $0x200] ss:$8 sps:$4 sm:$0xff]  }
  0xf8   : > { %v502_v58 = vadd.f32 %v501_v54, %v4292_v43  ;;  %v503_v59 = vpop.f32.mrb[11].mxu1  ;;  %1644 = vmatmul.mubr.bf16.gmra.mrb[48].mxu1 %v797_v9  ;;  %v626_v60 = vadd.f32 %v625_v57, %v4313_v10  ;;  %v627_v61 = vpop.f32.mrb[10].mxu0  ;;  %v773_v3 = vmax.f32 %v498_v49, 0.0  ;;  %v4341_v9 = vrot.slane %v4287_v41, %v294_v55  ;;  %v3628_v54 = vld [vmem:[%s4987_s3 + $0x214] ss:$8 sps:$4 sm:$0xff]  }
  0xf9   : > { %v504_v62 = vadd.f32 %v503_v59, %v4297_v44  ;;  %1653 = vmatprep.mubr.bf16.mxu1 %v806_v45  ;;  %v745_v0 = vmax.f32 %v624_v56, 0.0  ;;  %v628_v1 = vadd.f32 %v627_v61, %v4310_v7  ;;  %v629_v2 = vpop.f32.mrb[11].mxu0  ;;  %v774_v6 = vmax.f32 %v500_v53, 0.0 }
  0xfa   : > { %v781_v4 = vmax.f32 %v502_v58, 0.0  ;;  %v746_v5 = vmax.f32 %v626_v60, 0.0  ;;  %v630_v43 = vadd.f32 %v629_v2, %v4313_v10 }
  0xfb   : > { %v782_v8 = vmax.f32 %v504_v62, 0.0  ;;  %v753_v11 = vmax.f32 %v628_v1, 0.0 }
  0xfc   : > { %v813_v44 = vpack.c.bf16 %v781_v4, %v773_v3  ;;  %v754_v12 = vmax.f32 %v630_v43, 0.0 }
  0xfd   : > { %v814_v13 = vpack.c.bf16 %v782_v8, %v774_v6  ;;  %v540_v14 = vpop.f32.mrb[12].mxu1  ;;  %v4343_v15 = vpack.c.bf16 %v753_v11, %v745_v0 }
  0xfe   : > { %v541_v16 = vadd.f32 %v540_v14, %v4336_v63  ;;  %v542_v17 = vpop.f32.mrb[13].mxu1  ;;  %v4346_v18 = vpack.c.bf16 %v754_v12, %v746_v5  ;;  %v633_v19 = vpop.f32.mrb[12].mxu0  ;;  %v3626_v5 = vld [vmem:[%s4987_s3 + $0x210] ss:$8 sps:$4 sm:$0xff]   ;;  %v3631_v12 = vld [vmem:[%s4987_s3 + $0x224] ss:$8 sps:$4 sm:$0xff]  }
  0xff   : > { %v543_v20 = vadd.f32 %v542_v17, %v4341_v9  ;;  %v544_v21 = vpop.f32.mrb[14].mxu1  ;;  %v634_v22 = vadd.f32 %v633_v19, %v4310_v7  ;;  %v635_v23 = vpop.f32.mrb[13].mxu0 }
 0x100   : > { %v545_v24 = vadd.f32 %v544_v21, %v4336_v63  ;;  %v546_v25 = vpop.f32.mrb[15].mxu1  ;;  %1654 = vmatmul.mubr.bf16.gmra.mrb[52].mxu1 %v805_v36  ;;  %v636_v26 = vadd.f32 %v635_v23, %v4313_v10  ;;  %v637_v27 = vpop.f32.mrb[14].mxu0  ;;  %v727_v32 = vmax.f32 %v541_v16, 0.0 }
 0x101   : > { %v547_v28 = vadd.f32 %v546_v25, %v4341_v9  ;;  %1663 = vmatprep.mubr.bf16.mxu1 %v814_v13  ;;  %v761_v29 = vmax.f32 %v634_v22, 0.0  ;;  %v638_v30 = vadd.f32 %v637_v27, %v4310_v7  ;;  %v639_v31 = vpop.f32.mrb[15].mxu0  ;;  %v728_v37 = vmax.f32 %v543_v20, 0.0  ;;  %v3629_v22 = vld [vmem:[%s4987_s3 + $0x220] ss:$8 sps:$4 sm:$0xff]  }
 0x102   : > { %v735_v33 = vmax.f32 %v545_v24, 0.0  ;;  %v762_v34 = vmax.f32 %v636_v26, 0.0  ;;  %v640_v35 = vadd.f32 %v639_v31, %v4313_v10  ;;  %v3634_v25 = vld [vmem:[%s4987_s3 + $0x234] ss:$8 sps:$4 sm:$0xff]  }
 0x103   : > { %v736_v45 = vmax.f32 %v547_v28, 0.0  ;;  %v769_v46 = vmax.f32 %v638_v30, 0.0 }
 0x104   : > { %v791_v47 = vpack.c.bf16 %v735_v33, %v727_v32  ;;  %v770_v36 = vmax.f32 %v640_v35, 0.0  ;;  %v3632_v33 = vld [vmem:[%s4987_s3 + $0x230] ss:$8 sps:$4 sm:$0xff]  }
 0x105   : > { %v792_v49 = vpack.c.bf16 %v736_v45, %v728_v37  ;;  %v550_v52 = vpop.f32.mrb[16].mxu1  ;;  %v4358_v53 = vpack.c.bf16 %v769_v46, %v761_v29  ;;  %v3637_v37 = vld [vmem:[%s4987_s3 + $0x244] ss:$8 sps:$4 sm:$0xff]  }
 0x106   : > { %v551_v55 = vadd.f32 %v550_v52, %v4336_v63  ;;  %v552_v56 = vpop.f32.mrb[17].mxu1  ;;  %v4364_v57 = vpack.c.bf16 %v770_v36, %v762_v34  ;;  %v643_v58 = vpop.f32.mrb[16].mxu0  ;;  %v3635_v36 = vld [vmem:[%s4987_s3 + $0x240] ss:$8 sps:$4 sm:$0xff]   ;;  %v3640_v52 = vld [vmem:[%s4987_s3 + $0x254] ss:$8 sps:$4 sm:$0xff]  }
 0x107   : > { %1706 = vmatprep.mubr.bf16.mxu0 %v792_v49  ;;  %v553_v59 = vadd.f32 %v552_v56, %v4341_v9  ;;  %v554_v60 = vpop.f32.mrb[18].mxu1  ;;  %v644_v61 = vadd.f32 %v643_v58, %v4310_v7  ;;  %v645_v62 = vpop.f32.mrb[17].mxu0  ;;  %v306_v56 = vsub.s32 6, %v4279_v39 }
 0x108   : > { %1664 = vmatmul.mubr.bf16.gmra.mrb[56].mxu1 %v813_v44  ;;  %1707 = vmatmul.mubr.bf16.vlgmr.msra.gmra.mrb[20].mxu0 %v791_v47  ;;  %v743_v0 = vmax.f32 %v551_v55, 0.0  ;;  %v555_v1 = vadd.f32 %v554_v60, %v4336_v63  ;;  %v556_v2 = vpop.f32.mrb[19].mxu1  ;;  %v646_v3 = vadd.f32 %v645_v62, %v4313_v10  ;;  %v647_v4 = vpop.f32.mrb[18].mxu0  ;;  %v310_v60 = vsub.s32 7, %v4279_v39 }
 0x109   : > { %1748 = vmatpush1.bf16.msra.mxu0 %v3623_v50  ;;  %v744_v43 = vmax.f32 %v553_v59, 0.0  ;;  %v557_v6 = vadd.f32 %v556_v2, %v4341_v9  ;;  %v777_v8 = vmax.f32 %v644_v61, 0.0  ;;  %v648_v11 = vadd.f32 %v647_v4, %v4310_v7  ;;  %v649_v44 = vpop.f32.mrb[19].mxu0  ;;  %v3643_v4 = vld [vmem:[%s4987_s3 + $0x264] ss:$8 sps:$4 sm:$0xff]  }
 0x10a   : > { %1749 = vmatprep.subr.bf16.mxu0 %v3628_v54  ;;  %v751_v13 = vmax.f32 %v555_v1, 0.0  ;;  %v778_v14 = vmax.f32 %v646_v3, 0.0  ;;  %v650_v16 = vadd.f32 %v649_v44, %v4313_v10  ;;  %v3638_v1 = vld [vmem:[%s4987_s3 + $0x250] ss:$8 sps:$4 sm:$0xff]  }
 0x10b   : > { %v752_v17 = vmax.f32 %v557_v6, 0.0  ;;  %v785_v19 = vmax.f32 %v648_v11, 0.0  ;;  %v4421_v6 = vrot.slane %v4287_v41, %v310_v60  ;;  %v3641_v11 = vld [vmem:[%s4987_s3 + $0x260] ss:$8 sps:$4 sm:$0xff]  }
 0x10c   : > { %v799_v20 = vpack.c.bf16 %v751_v13, %v743_v0  ;;  %v786_v21 = vmax.f32 %v650_v16, 0.0 }
 0x10d   : > { %1750 = vmatpush1.bf16.msra.mxu0 %v3626_v5  ;;  %v800_v7 = vpack.c.bf16 %v752_v17, %v744_v43  ;;  %v560_v23 = vpop.f32.mrb[20].mxu1  ;;  %v4382_v24 = vpack.c.bf16 %v785_v19, %v777_v8  ;;  %v4418_v43 = vrot.slane %v4287_v41, %v306_v56 }
 0x10e   : > { %1751 = vmatprep.subr.bf16.mxu0 %v3631_v12  ;;  %v561_v10 = vadd.f32 %v560_v23, %v4336_v63  ;;  %v562_v26 = vpop.f32.mrb[21].mxu1  ;;  %v4388_v27 = vpack.c.bf16 %v786_v21, %v778_v14  ;;  %v3646_v12 = vld [vmem:[%s4987_s3 + $0x274] ss:$8 sps:$4 sm:$0xff]   ;;  %v3644_v21 = vld [vmem:[%s4987_s3 + $0x270] ss:$8 sps:$4 sm:$0xff]  }
 0x10f   : > { %v563_v28 = vadd.f32 %v562_v26, %v4341_v9  ;;  %v564_v29 = vpop.f32.mrb[22].mxu1  ;;  %1716 = vmatprep.mubr.bf16.mxu0 %v800_v7  ;;  %v3649_v23 = vld [vmem:[%s4987_s3 + $0x284] ss:$8 sps:$4 sm:$0xff]  }
 0x110   : > { %v759_v30 = vmax.f32 %v561_v10, 0.0  ;;  %v565_v31 = vadd.f32 %v564_v29, %v4336_v63  ;;  %v566_v32 = vpop.f32.mrb[23].mxu1  ;;  %1717 = vmatmul.mubr.bf16.gmra.mrb[24].mxu0 %v799_v20 }
 0x111   : > { %1752 = vmatpush1.bf16.msra.mxu0 %v3629_v22  ;;  %v760_v34 = vmax.f32 %v563_v28, 0.0  ;;  %v567_v35 = vadd.f32 %v566_v32, %v4341_v9  ;;  %v3647_v28 = vld [vmem:[%s4987_s3 + $0x280] ss:$8 sps:$4 sm:$0xff]  }
 0x112   : > { %1753 = vmatprep.subr.bf16.mxu0 %v3634_v25  ;;  %v767_v45 = vmax.f32 %v565_v31, 0.0 }
 0x113   : > { %v768_v46 = vmax.f32 %v567_v35, 0.0 }
 0x114   : > { %v807_v47 = vpack.c.bf16 %v767_v45, %v759_v30  ;;  %v3652_v30 = vld [vmem:[%s4987_s3 + $0x294] ss:$8 sps:$4 sm:$0xff]  }
 0x115   : > { %1754 = vmatpush1.bf16.msra.mxu0 %v3632_v33  ;;  %v808_v49 = vpack.c.bf16 %v768_v46, %v760_v34  ;;  %v570_v50 = vpop.f32.mrb[24].mxu1  ;;  %v3650_v46 = vld [vmem:[%s4987_s3 + $0x290] ss:$8 sps:$4 sm:$0xff]  }
 0x116   : > { %1755 = vmatprep.subr.bf16.mxu0 %v3637_v37  ;;  %v571_v54 = vadd.f32 %v570_v50, %v4336_v63  ;;  %v572_v55 = vpop.f32.mrb[25].mxu1 }
 0x117   : > { %v573_v58 = vadd.f32 %v572_v55, %v4341_v9  ;;  %v574_v59 = vpop.f32.mrb[26].mxu1  ;;  %1726 = vmatprep.mubr.bf16.mxu0 %v808_v49  ;;  %v3655_v49 = vld [vmem:[%s4987_s3 + $0x2a4] ss:$8 sps:$4 sm:$0xff]   ;;  %v3653_v55 = vld [vmem:[%s4987_s3 + $0x2a0] ss:$8 sps:$4 sm:$0xff]  }
 0x118   : > { %v775_v61 = vmax.f32 %v571_v54, 0.0  ;;  %v575_v62 = vadd.f32 %v574_v59, %v4336_v63  ;;  %v576_v0 = vpop.f32.mrb[27].mxu1  ;;  %1727 = vmatmul.mubr.bf16.gmra.mrb[28].mxu0 %v807_v47  ;;  %v3658_v59 = vld [vmem:[%s4987_s3 + $0x2b4] ss:$8 sps:$4 sm:$0xff]  }
 0x119   : > { %1756 = vmatpush1.bf16.msra.mxu0 %v3635_v36  ;;  %v776_v2 = vmax.f32 %v573_v58, 0.0  ;;  %v577_v3 = vadd.f32 %v576_v0, %v4341_v9 }
 0x11a   : > { %1757 = vmatprep.subr.bf16.mxu0 %v3640_v52  ;;  %v783_v5 = vmax.f32 %v575_v62, 0.0 }
 0x11b   : > { %v784_v63 = vmax.f32 %v577_v3, 0.0 }
 0x11c   : > { %v815_v8 = vpack.c.bf16 %v783_v5, %v775_v61 }
 0x11d   : > { %1758 = vmatpush1.bf16.msra.mxu0 %v3638_v1  ;;  %v816_v9 = vpack.c.bf16 %v784_v63, %v776_v2  ;;  %v686_v44 = vpop.f32.mrb[28].mxu1 }
 0x11e   : > { %1759 = vmatprep.subr.bf16.mxu0 %v3643_v4  ;;  %v687_v13 = vadd.f32 %v686_v44, %v4418_v43  ;;  %v688_v14 = vpop.f32.mrb[29].mxu1  ;;  %v3656_v4 = vld [vmem:[%s4987_s3 + $0x2b0] ss:$8 sps:$4 sm:$0xff]  }
 0x11f   : > { %1736 = vmatprep.mubr.bf16.mxu0 %v816_v9  ;;  %v689_v41 = vadd.f32 %v688_v14, %v4421_v6  ;;  %v690_v16 = vpop.f32.mrb[30].mxu1 }
 0x120   : > { %1737 = vmatmul.mubr.bf16.gmra.mrb[32].mxu0 %v815_v8  ;;  %v731_v17 = vmax.f32 %v687_v13, 0.0  ;;  %v691_v19 = vadd.f32 %v690_v16, %v4418_v43  ;;  %v692_v20 = vpop.f32.mrb[31].mxu1  ;;  %v3661_v8 = vld [vmem:[%s4987_s3 + $0x2c4] ss:$8 sps:$4 sm:$0xff]  }
 0x121   : > { %1760 = vmatpush1.bf16.msra.mxu0 %v3641_v11  ;;  %1779 = vmatprep.mubr.bf16.mxu0 %v4327_v51  ;;  %v732_v22 = vmax.f32 %v689_v41, 0.0  ;;  %v693_v7 = vadd.f32 %v692_v20, %v4421_v6  ;;  %v3664_v41 = vld [vmem:[%s4987_s3 + $0x2d4] ss:$8 sps:$4 sm:$0xff]  }
 0x122   : > { %1761 = vmatprep.subr.bf16.mxu0 %v3646_v12  ;;  %v739_v25 = vmax.f32 %v691_v19, 0.0  ;;  %v3659_v12 = vld [vmem:[%s4987_s3 + $0x2c0] ss:$8 sps:$4 sm:$0xff]  }
 0x123   : > { %v740_v10 = vmax.f32 %v693_v7, 0.0 }
 0x124   : > { %v4440_v26 = vpack.c.bf16 %v739_v25, %v731_v17 }
 0x125   : > { %1762 = vmatpush1.bf16.msra.mxu0 %v3644_v21  ;;  %v4445_v29 = vpack.c.bf16 %v740_v10, %v732_v22  ;;  %v696_v51 = vpop.f32.mrb[32].mxu1 }
 0x126   : > { %1763 = vmatprep.subr.bf16.mxu0 %v3649_v23  ;;  %v697_v31 = vadd.f32 %v696_v51, %v4418_v43  ;;  %v698_v32 = vpop.f32.mrb[33].mxu1  ;;  %v3662_v23 = vld [vmem:[%s4987_s3 + $0x2d0] ss:$8 sps:$4 sm:$0xff]  }
 0x127   : > { %v699_v33 = vadd.f32 %v698_v32, %v4421_v6  ;;  %v700_v34 = vpop.f32.mrb[34].mxu1 }
 0x128   : > { %v747_v35 = vmax.f32 %v697_v31, 0.0  ;;  %v701_v37 = vadd.f32 %v700_v34, %v4418_v43  ;;  %v702_v45 = vpop.f32.mrb[35].mxu1  ;;  %v3673_v34 = vld [vmem:[%s4987_s3 + $0x304] ss:$8 sps:$4 sm:$0xff]  }
 0x129   : > { %1764 = vmatpush1.bf16.msra.mxu0 %v3647_v28  ;;  %v748_v47 = vmax.f32 %v699_v33, 0.0  ;;  %v703_v36 = vadd.f32 %v702_v45, %v4421_v6  ;;  %v3667_v28 = vld [vmem:[%s4987_s3 + $0x2e4] ss:$8 sps:$4 sm:$0xff]   ;;  %v3668_v33 = vld [vmem:[%s4987_s3 + $0x2f0] ss:$8 sps:$4 sm:$0xff]  }
 0x12a   : > { %1765 = vmatprep.subr.bf16.mxu0 %v3652_v30  ;;  %v755_v50 = vmax.f32 %v701_v37, 0.0  ;;  %v3676_v37 = vld [vmem:[%s4987_s3 + $0x314] ss:$8 sps:$4 sm:$0xff]   ;;  %v3674_v45 = vld [vmem:[%s4987_s3 + $0x310] ss:$8 sps:$4 sm:$0xff]  }
 0x12b   : > { %v756_v52 = vmax.f32 %v703_v36, 0.0  ;;  %v3685_v36 = vld [vmem:[%s4987_s3 + $0x344] ss:$8 sps:$4 sm:$0xff]  }
 0x12c   : > { %v4460_v54 = vpack.c.bf16 %v755_v50, %v747_v35  ;;  %v3671_v35 = vld [vmem:[%s4987_s3 + $0x300] ss:$8 sps:$4 sm:$0xff]   ;;  %v3691_v50 = vld [vmem:[%s4987_s3 + $0x364] ss:$8 sps:$4 sm:$0xff]  }
 0x12d   : > { %1766 = vmatpush1.bf16.msra.mxu0 %v3650_v46  ;;  %v4465_v56 = vpack.c.bf16 %v756_v52, %v748_v47  ;;  %v706_v58 = vpop.f32.mrb[36].mxu1  ;;  %v3679_v46 = vld [vmem:[%s4987_s3 + $0x324] ss:$8 sps:$4 sm:$0xff]   ;;  %v3677_v47 = vld [vmem:[%s4987_s3 + $0x320] ss:$8 sps:$4 sm:$0xff]  }
 0x12e   : > { %1767 = vmatprep.subr.bf16.mxu0 %v3655_v49  ;;  %v707_v60 = vadd.f32 %v706_v58, %v4418_v43  ;;  %v708_v61 = vpop.f32.mrb[37].mxu1  ;;  %v3683_v49 = vld [vmem:[%s4987_s3 + $0x340] ss:$8 sps:$4 sm:$0xff]  }
 0x12f   : > { %v709_v62 = vadd.f32 %v708_v61, %v4421_v6  ;;  %v710_v0 = vpop.f32.mrb[38].mxu1  ;;  %v3689_v52 = vld [vmem:[%s4987_s3 + $0x360] ss:$8 sps:$4 sm:$0xff]   ;;  %v3706_v61 = vld [vmem:[%s4987_s3 + $0x3b4] ss:$8 sps:$4 sm:$0xff]  }
 0x130   : > { %v763_v1 = vmax.f32 %v707_v60, 0.0  ;;  %v711_v2 = vadd.f32 %v710_v0, %v4418_v43  ;;  %v712_v3 = vpop.f32.mrb[39].mxu1  ;;  %v3695_v58 = vld [vmem:[%s4987_s3 + $0x380] ss:$8 sps:$4 sm:$0xff]   ;;  %v3709_v0 = vld [vmem:[%s4987_s3 + $0x3c4] ss:$8 sps:$4 sm:$0xff]  }
 0x131   : > { %1768 = vmatpush1.bf16.msra.mxu0 %v3653_v55  ;;  %v764_v5 = vmax.f32 %v709_v62, 0.0  ;;  %v713_v63 = vadd.f32 %v712_v3, %v4421_v6  ;;  %v3697_v55 = vld [vmem:[%s4987_s3 + $0x384] ss:$8 sps:$4 sm:$0xff]   ;;  %v3701_v60 = vld [vmem:[%s4987_s3 + $0x3a0] ss:$8 sps:$4 sm:$0xff]  }
 0x132   : > { %1769 = vmatprep.subr.bf16.mxu0 %v3658_v59  ;;  %v771_v11 = vmax.f32 %v711_v2, 0.0  ;;  %v3703_v59 = vld [vmem:[%s4987_s3 + $0x3a4] ss:$8 sps:$4 sm:$0xff]   ;;  %v3704_v62 = vld [vmem:[%s4987_s3 + $0x3b0] ss:$8 sps:$4 sm:$0xff]  }
 0x133   : > { %v772_v9 = vmax.f32 %v713_v63, 0.0  ;;  %v3712_v2 = vld [vmem:[%s4987_s3 + $0x3d4] ss:$8 sps:$4 sm:$0xff]   ;;  %v3710_v3 = vld [vmem:[%s4987_s3 + $0x3d0] ss:$8 sps:$4 sm:$0xff]  }
 0x134   : > { %v4480_v44 = vpack.c.bf16 %v771_v11, %v763_v1  ;;  %v3707_v1 = vld [vmem:[%s4987_s3 + $0x3c0] ss:$8 sps:$4 sm:$0xff]   ;;  %v3718_v63 = vld [vmem:[%s4987_s3 + $0x3f4] ss:$8 sps:$4 sm:$0xff]  }
 0x135   : > { %1770 = vmatpush1.bf16.msra.mxu0 %v3656_v4  ;;  %v4485_v13 = vpack.c.bf16 %v772_v9, %v764_v5  ;;  %v716_v14 = vpop.f32.mrb[40].mxu1  ;;  %v3715_v4 = vld [vmem:[%s4987_s3 + $0x3e4] ss:$8 sps:$4 sm:$0xff]   ;;  %v3713_v5 = vld [vmem:[%s4987_s3 + $0x3e0] ss:$8 sps:$4 sm:$0xff]  }
 0x136   : > { %1771 = vmatprep.subr.bf16.mxu0 %v3661_v8  ;;  %v717_v16 = vadd.f32 %v716_v14, %v4418_v43  ;;  %v718_v17 = vpop.f32.mrb[41].mxu1  ;;  %v3716_v8 = vld [vmem:[%s4987_s3 + $0x3f0] ss:$8 sps:$4 sm:$0xff]   ;;  %v949_v11 = vld [vmem:[%s4988_s4] sm:$0x3] }
 0x137   : > { %v719_v19 = vadd.f32 %v718_v17, %v4421_v6  ;;  %v720_v20 = vpop.f32.mrb[42].mxu1  ;;  %v954_v9 = vrot.slane %v949_v11, %v4282_v40 }
 0x138   : > { %v779_v21 = vmax.f32 %v717_v16, 0.0  ;;  %v721_v22 = vadd.f32 %v720_v20, %v4418_v43  ;;  %v722_v7 = vpop.f32.mrb[43].mxu1  ;;  %v3665_v43 = vld [vmem:[%s4987_s3 + $0x2e0] ss:$8 sps:$4 sm:$0xff]  }
 0x139   : > { %1772 = vmatpush1.bf16.msra.mxu0 %v3659_v12  ;;  %v780_v25 = vmax.f32 %v719_v19, 0.0  ;;  %v723_v10 = vadd.f32 %v722_v7, %v4421_v6  ;;  %v3670_v6 = vld [vmem:[%s4987_s3 + $0x2f4] ss:$8 sps:$4 sm:$0xff]  }
 0x13a   : > { %1773 = vmatprep.subr.bf16.mxu0 %v3664_v41  ;;  %v787_v51 = vmax.f32 %v721_v22, 0.0 }
 0x13b   : > { %v788_v30 = vmax.f32 %v723_v10, 0.0 }
 0x13c   : > { %v4500_v31 = vpack.c.bf16 %v787_v51, %v779_v21 }
 0x13d   : > { %1774 = vmatpush1.bf16.msra.mxu0 %v3662_v23  ;;  %v4505_v32 = vpack.c.bf16 %v788_v30, %v780_v25 }
 0x13e   : > { %1775 = vmatprep.subr.bf16.mxu0 %v3667_v28 }
 0x141   : > { %1776 = vmatpush1.bf16.msra.mxu0 %v3665_v43 }
 0x142   : > { %1777 = vmatprep.subr.bf16.mxu0 %v3670_v6  ;;  %v3914_v6 = vmov 0.0|0.0  }
 0x143   : > { %3373 = vmatprep.subr.bf16.mxu1 %v3914_v6 }
 0x145   : > { %1778 = vmatpush1.bf16.msra.mxu0 %v3668_v33  ;;  %v3916_v33 = vmov 0.0  }
 0x146   : > { %1820 = vmatprep.subr.bf16.mxu0 %v3673_v34  ;;  %3292 = vmatprep.mubr.msk.f32.mxu1 %vm3915_vm1, %v3916_v33  ;;  %v958_v34 = vrot.slane %v949_v11, %v286_v42 }
 0x148   : > { %1780 = vmatmul.mubr.bf16.vlgmr.msra.gmra.mrb[20].mxu0 %v4324_v48  ;;  %v3682_v48 = vld [vmem:[%s4987_s3 + $0x334] ss:$8 sps:$4 sm:$0xff]  }
 0x149   : > { %1821 = vmatpush1.bf16.msra.mxu0 %v3671_v35  ;;  %1789 = vmatprep.mubr.bf16.mxu0 %v4346_v18  ;;  %v3680_v18 = vld [vmem:[%s4987_s3 + $0x330] ss:$8 sps:$4 sm:$0xff]  }
 0x14a   : > { %1822 = vmatprep.subr.bf16.mxu0 %v3676_v37 }
 0x14d   : > { %1823 = vmatpush1.bf16.msra.mxu0 %v3674_v45 }
 0x14e   : > { %1824 = vmatprep.subr.bf16.mxu0 %v3679_v46 }
 0x150   : > { %1790 = vmatmul.mubr.bf16.gmra.mrb[24].mxu0 %v4343_v15  ;;  %v3688_v15 = vld [vmem:[%s4987_s3 + $0x354] ss:$8 sps:$4 sm:$0xff]  }
 0x151   : > { %1825 = vmatpush1.bf16.msra.mxu0 %v3677_v47  ;;  %1799 = vmatprep.mubr.bf16.mxu0 %v4364_v57  ;;  %v3686_v57 = vld [vmem:[%s4987_s3 + $0x350] ss:$8 sps:$4 sm:$0xff]  }
 0x152   : > { %1826 = vmatprep.subr.bf16.mxu0 %v3682_v48 }
 0x155   : > { %1827 = vmatpush1.bf16.msra.mxu0 %v3680_v18 }
 0x156   : > { %1828 = vmatprep.subr.bf16.mxu0 %v3685_v36 }
 0x158   : > { %1800 = vmatmul.mubr.bf16.gmra.mrb[28].mxu0 %v4358_v53  ;;  %v3694_v53 = vld [vmem:[%s4987_s3 + $0x374] ss:$8 sps:$4 sm:$0xff]  }
 0x159   : > { %1829 = vmatpush1.bf16.msra.mxu0 %v3683_v49  ;;  %1809 = vmatprep.mubr.bf16.mxu0 %v4388_v27  ;;  %v3692_v27 = vld [vmem:[%s4987_s3 + $0x370] ss:$8 sps:$4 sm:$0xff]  }
 0x15a   : > { %1830 = vmatprep.subr.bf16.mxu0 %v3688_v15 }
 0x15d   : > { %1831 = vmatpush1.bf16.msra.mxu0 %v3686_v57 }
 0x15e   : > { %1832 = vmatprep.subr.bf16.mxu0 %v3691_v50 }
 0x160   : > { %1810 = vmatmul.mubr.bf16.gmra.mrb[32].mxu0 %v4382_v24  ;;  %v3700_v24 = vld [vmem:[%s4987_s3 + $0x394] ss:$8 sps:$4 sm:$0xff]  }
 0x161   : > { %1833 = vmatpush1.bf16.msra.mxu0 %v3689_v52  ;;  %1852 = vmatprep.mubr.bf16.mxu0 %v4445_v29  ;;  %v3698_v29 = vld [vmem:[%s4987_s3 + $0x390] ss:$8 sps:$4 sm:$0xff]  }
 0x162   : > { %1834 = vmatprep.subr.bf16.mxu0 %v3694_v53 }
 0x165   : > { %1835 = vmatpush1.bf16.msra.mxu0 %v3692_v27 }
 0x166   : > { %1836 = vmatprep.subr.bf16.mxu0 %v3697_v55 }
 0x169   : > { %1837 = vmatpush1.bf16.msra.mxu0 %v3695_v58 }
 0x16a   : > { %1838 = vmatprep.subr.bf16.mxu0 %v3700_v24 }
 0x16d   : > { %1839 = vmatpush1.bf16.msra.mxu0 %v3698_v29 }
 0x16e   : > { %1840 = vmatprep.subr.bf16.mxu0 %v3703_v59 }
 0x171   : > { %1841 = vmatpush1.bf16.msra.mxu0 %v3701_v60 }
 0x172   : > { %1842 = vmatprep.subr.bf16.mxu0 %v3706_v61 }
 0x175   : > { %1843 = vmatpush1.bf16.msra.mxu0 %v3704_v62 }
 0x176   : > { %1844 = vmatprep.subr.bf16.mxu0 %v3709_v0 }
 0x179   : > { %1845 = vmatpush1.bf16.msra.mxu0 %v3707_v1 }
 0x17a   : > { %1846 = vmatprep.subr.bf16.mxu0 %v3712_v2 }
 0x17d   : > { %1847 = vmatpush1.bf16.msra.mxu0 %v3710_v3 }
 0x17e   : > { %1848 = vmatprep.subr.bf16.mxu0 %v3715_v4 }
 0x181   : > { %1849 = vmatpush1.bf16.msra.mxu0 %v3713_v5  ;;  %v4646_v5 = vand.u32 127, %v280_v38 }
 0x182   : > { %1850 = vmatprep.subr.bf16.mxu0 %v3718_v63 }
 0x183   : > { %vm1918_vm2 = vcmp.lt.s32.totalorder %v4646_v5, 9  ;;  %vm1920_vm4 = vcmp.eq.s32.totalorder %v4646_v5, 8  ;;  %vm1919_vm5 = vcmp.lt.s32.totalorder %v4646_v5, 8 }
 0x185   : > { %1851 = vmatpush1.bf16.msra.mxu0 %v3716_v8 }
 0x188   : > { %1853 = vmatmul.mubr.bf16.vlgmr.msra.gmra.mrb[20].mxu0 %v4440_v26 }
 0x189   : > { %1862 = vmatprep.mubr.bf16.mxu0 %v4465_v56 }
 0x190   : > { %1863 = vmatmul.mubr.bf16.gmra.mrb[24].mxu0 %v4460_v54 }
 0x191   : > { %1872 = vmatprep.mubr.bf16.mxu0 %v4485_v13 }
 0x198   : > { %1873 = vmatmul.mubr.bf16.gmra.mrb[28].mxu0 %v4480_v44 }
 0x199   : > { %1882 = vmatprep.mubr.bf16.mxu0 %v4505_v32 }
 0x1a0   : > { %1883 = vmatmul.mubr.bf16.gmra.mrb[32].mxu0 %v4500_v31 }
 0x1c3   : > { %v1635_v12 = vpop.f32.mrb[44].mxu1 }
 0x1c4   : > { %v1636_v26 = vadd.f32 %v1635_v12, %v954_v9  ;;  %v1637_v14 = vpop.f32.mrb[45].mxu1 }
 0x1c5   : > { %v1639_v56 = vpop.f32.mrb[46].mxu1  ;;  %v1638_v35 = vadd.f32 %v1637_v14, %v958_v34 }
 0x1c6   : > { %v1640_v41 = vadd.f32 %v1639_v56, %v954_v9  ;;  %v1641_v54 = vpop.f32.mrb[47].mxu1 }
 0x1c7   : > { %v1642_v47 = vadd.f32 %v1641_v54, %v958_v34 }
 0x1cb   : > { %v1645_v16 = vpop.f32.mrb[48].mxu1 }
 0x1cc   : > { %v1646_v13 = vadd.f32 %v1645_v16, %v954_v9  ;;  %v1647_v17 = vpop.f32.mrb[49].mxu1 }
 0x1cd   : > { %v1649_v44 = vpop.f32.mrb[50].mxu1  ;;  %v1648_v57 = vadd.f32 %v1647_v17, %v958_v34 }
 0x1ce   : > { %v1650_v19 = vadd.f32 %v1649_v44, %v954_v9  ;;  %v1651_v20 = vpop.f32.mrb[51].mxu1 }
 0x1cf   : > { %v1652_v27 = vadd.f32 %v1651_v20, %v958_v34 }
 0x1d3   : > { %v1655_v21 = vpop.f32.mrb[52].mxu1 }
 0x1d4   : > { %v1656_v22 = vadd.f32 %v1655_v21, %v954_v9  ;;  %v1657_v7 = vpop.f32.mrb[53].mxu1 }
 0x1d5   : > { %v1659_v23 = vpop.f32.mrb[54].mxu1  ;;  %v1658_v29 = vadd.f32 %v1657_v7, %v958_v34 }
 0x1d6   : > { %v1660_v25 = vadd.f32 %v1659_v23, %v954_v9  ;;  %v1661_v10 = vpop.f32.mrb[55].mxu1 }
 0x1d7   : > { %v1662_v62 = vadd.f32 %v1661_v10, %v958_v34 }
 0x1db   : > { %v1665_v28 = vpop.f32.mrb[56].mxu1 }
 0x1dc   : > { %v1666_v51 = vadd.f32 %v1665_v28, %v954_v9  ;;  %v1667_v30 = vpop.f32.mrb[57].mxu1 }
 0x1dd   : > { %v1669_v31 = vpop.f32.mrb[58].mxu1  ;;  %v1668_v63 = vadd.f32 %v1667_v30, %v958_v34 }
 0x1de   : > { %v1670_v43 = vadd.f32 %v1669_v31, %v954_v9  ;;  %v1671_v32 = vpop.f32.mrb[59].mxu1 }
 0x1df   : > { %v1672_v12 = vadd.f32 %v1671_v32, %v958_v34 }
 0x25b   : > { %v1854_v37 = vpop.f32.mrb[20].mxu0 }
 0x25c   : > { %v4633_v45 = vadd.f32 %v1854_v37, %v1636_v26  ;;  %v1856_v46 = vpop.f32.mrb[21].mxu0 }
 0x25d   : > { %v3432_v48 = vadd.f32 %v1856_v46, %v1638_v35  ;;  %v1858_v18 = vpop.f32.mrb[22].mxu0 }
 0x25e   : > { %v4635_v36 = vadd.f32 %v1858_v18, %v1640_v41  ;;  %v1860_v49 = vpop.f32.mrb[23].mxu0 }
 0x25f   : > { %v3436_v15 = vadd.f32 %v1860_v49, %v1642_v47  ;;  %v4671_v44 = vsel %vm1918_vm2, %v3432_v48, -1e+30 }
 0x261   : > { %v4659_v38 = vsel %vm1918_vm2, %v3436_v15, -1e+30 }
 0x263   : > { %v1864_v50 = vpop.f32.mrb[24].mxu0 }
 0x264   : > { %v4637_v52 = vadd.f32 %v1864_v50, %v1646_v13  ;;  %v1866_v53 = vpop.f32.mrb[25].mxu0 }
 0x265   : > { %v3440_v39 = vadd.f32 %v1866_v53, %v1648_v57  ;;  %v1868_v42 = vpop.f32.mrb[26].mxu0 }
 0x266   : > { %v4639_v55 = vadd.f32 %v1868_v42, %v1650_v19  ;;  %v1870_v58 = vpop.f32.mrb[27].mxu0 }
 0x267   : > { %v3444_v24 = vadd.f32 %v1870_v58, %v1652_v27  ;;  %v4677_v20 = vsel %vm1918_vm2, %v3440_v39, -1e+30 }
 0x269   : > { %v4681_v21 = vsel %vm1918_vm2, %v3444_v24, -1e+30 }
 0x26b   : > { %v1874_v59 = vpop.f32.mrb[28].mxu0 }
 0x26c   : > { %v4641_v60 = vadd.f32 %v1874_v59, %v1656_v22  ;;  %v1876_v61 = vpop.f32.mrb[29].mxu0 }
 0x26d   : > { %v3448_v0 = vadd.f32 %v1876_v61, %v1658_v29  ;;  %v1878_v1 = vpop.f32.mrb[30].mxu0 }
 0x26e   : > { %v4643_v2 = vadd.f32 %v1878_v1, %v1660_v25  ;;  %v1880_v3 = vpop.f32.mrb[31].mxu0 }
 0x26f   : > { %v3452_v4 = vadd.f32 %v1880_v3, %v1662_v62  ;;  %v4663_v16 = vsel %vm1918_vm2, %v3448_v0, -1e+30 }
 0x270   : > { %v1949_v7 = vmax.f32 %v4671_v44, %v4663_v16 }
 0x271   : > { %v4653_v26 = vsel %vm1918_vm2, %v3452_v4, -1e+30 }
 0x272   : > { %v1950_v19 = vmax.f32 %v4659_v38, %v4653_v26 }
 0x273   : > { %v1884_v8 = vpop.f32.mrb[32].mxu0 }
 0x274   : > { %v4649_v11 = vadd.f32 %v1884_v8, %v1666_v51  ;;  %v1886_v9 = vpop.f32.mrb[33].mxu0  ;;  %v1953_v10 = vmax.f32 %v1949_v7, %v1950_v19  ;;  %v3918_v19 = vmov -1e+30  }
 0x275   : > { %v3456_v14 = vadd.f32 %v1886_v9, %v1668_v63  ;;  %v1888_v56 = vpop.f32.mrb[34].mxu0  ;;  %v1921_v7 = vsel %vm1920_vm4, -0.25131464, %v3918_v19 }
 0x276   : > { %v4655_v41 = vadd.f32 %v1888_v56, %v1670_v43  ;;  %v1890_v54 = vpop.f32.mrb[35].mxu0  ;;  %v3917_v56 = vmov 1.0  }
 0x277   : > { %v4667_v13 = vsel %vm1918_vm2, %v3456_v14, -1e+30  ;;  %v3460_v17 = vadd.f32 %v1890_v54, %v1672_v12 }
 0x278   : > { %v1951_v23 = vmax.f32 %v4677_v20, %v4667_v13 }
 0x279   : > { %v4685_v22 = vsel %vm1918_vm2, %v3460_v17, -1e+30 }
 0x27a   : > { %v1952_v25 = vmax.f32 %v4681_v21, %v4685_v22 }
 0x27c   : > { %v1954_v28 = vmax.f32 %v1951_v23, %v1952_v25 }
 0x27e   : > { %v1955_v51 = vmax.f32 %v1953_v10, %v1954_v28  ;;  %v4711_v10 = vsel %vm1919_vm5, -4.276666, %v1921_v7 }
 0x280   : > { %v1956_v30 = vrot.slane %v1955_v51, 4 }
 0x282   : > { %v1957_v31 = vmax.f32 %v1955_v51, %v1956_v30 }
 0x284   : > { %v1958_v43 = vrot.slane %v1957_v31, 2 }
 0x286   : > { %v1959_v32 = vmax.f32 %v1957_v31, %v1958_v43 }
 0x288   : > { %v1960_v34 = vrot.slane %v1959_v32, 1 }
 0x28a   : > { %v1961_v35 = vmax.f32 %v1959_v32, %v1960_v34 }
 0x28c   : > { %v1962_v37 = vsub.f32 %v4671_v44, %v1961_v35  ;;  %v1963_v46 = vsub.f32 %v4659_v38, %v1961_v35  ;;  %v1964_v47 = vsub.f32 %v4677_v20, %v1961_v35  ;;  %v1965_v48 = vsub.f32 %v4681_v21, %v1961_v35 }
 0x28d   : > { %v1966_v57 = vsub.f32 %v4663_v16, %v1961_v35  ;;  %v1967_v53 = vsub.f32 %v4653_v26, %v1961_v35  ;;  %v1969_v27 = vsub.f32 %v4685_v22, %v1961_v35  ;;  %v1968_v58 = vsub.f32 %v4667_v13, %v1961_v35 }
 0x28e   : > { %v1970_v18 = vmul.f32 1.442695, %v1962_v37  ;;  %v1972_v49 = vmul.f32 1.442695, %v1963_v46  ;;  %v1974_v15 = vmul.f32 1.442695, %v1964_v47 }
 0x28f   : > { %v1976_v50 = vmul.f32 1.442695, %v1965_v48  ;;  %v1978_v39 = vmul.f32 1.442695, %v1966_v57  ;;  %v1980_v42 = vmul.f32 1.442695, %v1967_v53 }
 0x290   : > { %3719 = vpow2.f32 %v1970_v18  ;;  %v1984_v24 = vmul.f32 1.442695, %v1969_v27  ;;  %v1982_v29 = vmul.f32 1.442695, %v1968_v58 }
 0x291   : > { %3721 = vpow2.f32 %v1972_v49 }
 0x292   : > { %3723 = vpow2.f32 %v1974_v15 }
 0x293   : > { %3725 = vpow2.f32 %v1976_v50 }
 0x294   : > { %3727 = vpow2.f32 %v1978_v39 }
 0x295   : > { %3729 = vpow2.f32 %v1980_v42 }
 0x296   : > { %3731 = vpow2.f32 %v1984_v24 }
 0x297   : > { %3733 = vpow2.f32 %v1982_v29 }
 0x29a   : > { %v3720_v59 = vpop.eup %3719 }
 0x29b   : > { %v3722_v61 = vpop.eup %3721 }
 0x29c   : > { %v3724_v62 = vpop.eup %3723  ;;  %v3374_v0 = vpack.c.bf16 %v3722_v61, %v3720_v59 }
 0x29d   : > { %v3726_v1 = vpop.eup %3725 }
 0x29e   : > { %3375 = vmatpush3.bf16.msra.mxu1 %v3374_v0  ;;  %v3728_v3 = vpop.eup %3727  ;;  %v3377_v4 = vpack.c.bf16 %v3726_v1, %v3724_v62 }
 0x29f   : > { %3376 = vmatprep.subr.bf16.mxu1 %v3914_v6  ;;  %v3730_v63 = vpop.eup %3729 }
 0x2a0   : > { %v3732_v8 = vpop.eup %3731  ;;  %v3380_v9 = vpack.c.bf16 %v3730_v63, %v3728_v3 }
 0x2a1   : > { %v3734_v12 = vpop.eup %3733 }
 0x2a2   : > { %3378 = vmatpush3.bf16.msra.mxu1 %v3377_v4  ;;  %v3383_v14 = vpack.c.bf16 %v3732_v8, %v3734_v12 }
 0x2a3   : > { %3379 = vmatprep.subr.bf16.mxu1 %v3914_v6 }
 0x2a6   : > { %3381 = vmatpush3.bf16.msra.mxu1 %v3380_v9 }
 0x2a7   : > { %3382 = vmatprep.subr.bf16.mxu1 %v3914_v6 }
 0x2aa   : > { %3384 = vmatpush3.bf16.msra.mxu1 %v3383_v14 }
 0x2ab   : > { %3385 = vmatprep.subr.bf16.mxu1 %v3914_v6 }
 0x2ad   : > { %3293 = vmatmul.mubr.msk.f32.vlgmr.msra.gmra.mrb[60].mxu1 %vm1986_vm3, %v3917_v56 }
 0x2ae   : > { %3311 = vmatprep.mubr.msk.f32.mxu1 %vm3915_vm1, %v3916_v33 }
 0x380   : > { %v2056_v54 = vpop.f32.mrb[60].mxu1 }
 0x381   : > { %3735 = vlog2.f32 %v2056_v54  ;;  %v3294_v17 = vpop.f32.mrb[61].mxu1 }
 0x38b   : > { %v3736_v23 = vpop.eup %3735 }
 0x38c   : > { %v2061_v25 = vmul.f32 0.6931472, %v3736_v23 }
 0x38e   : > { %v2062_v28 = vadd.f32 %v2061_v25, %v1961_v35 }
 0x390   : > { %v2063_v51 = vsub.f32 %v4711_v10, %v2062_v28 }
 0x392   : > { %v2064_v30 = vsel %vm1918_vm2, %v2063_v51, 0.0 }
 0x393   : > { %v2068_v31 = vrot.slane %v2064_v30, %v4282_v40 }
 0x395   : > { %v2071_v43 = vadd.f32 %v2068_v31, %v4677_v20  ;;  %v2069_v32 = vadd.f32 %v2068_v31, %v4671_v44  ;;  %v2072_v34 = vadd.f32 %v2068_v31, %v4681_v21  ;;  %v2070_v37 = vadd.f32 %v2068_v31, %v4659_v38 }
 0x396   : > { %v2074_v35 = vadd.f32 %v2068_v31, %v4653_v26  ;;  %v2073_v46 = vadd.f32 %v2068_v31, %v4663_v16  ;;  %v2076_v47 = vadd.f32 %v2068_v31, %v4685_v22  ;;  %v2075_v48 = vadd.f32 %v2068_v31, %v4667_v13 }
 0x397   : > { %2081 = vmax.xlane.f32.xlu1 %v2071_v43  ;;  %2077 = vmax.xlane.f32.xlu0 %v2069_v32 }
 0x39b   : > { %2083 = vmax.xlane.f32.xlu1 %v2072_v34  ;;  %2079 = vmax.xlane.f32.xlu0 %v2070_v37 }
 0x39f   : > { %2087 = vmax.xlane.f32.xlu1 %v2074_v35  ;;  %2085 = vmax.xlane.f32.xlu0 %v2073_v46 }
 0x3a3   : > { %2091 = vmax.xlane.f32.xlu1 %v2076_v47  ;;  %2089 = vmax.xlane.f32.xlu0 %v2075_v48 }
 0x424   : > { %v4725_v18 = vpop.xlane.xlu1 %2081  ;;  %v4727_v49 = vpop.xlane.xlu0 %2077 }
 0x425   : > { %v2095_v15 = vsub.f32 %v2071_v43, %v4725_v18  ;;  %v2093_v57 = vsub.f32 %v2069_v32, %v4727_v49 }
 0x427   : > { %v2101_v50 = vmul.f32 1.442695, %v2093_v57  ;;  %v2105_v39 = vmul.f32 1.442695, %v2095_v15 }
 0x428   : > { %v4731_v53 = vpop.xlane.xlu1 %2083  ;;  %v4733_v27 = vpop.xlane.xlu0 %2079 }
 0x429   : > { %v2096_v42 = vsub.f32 %v2072_v34, %v4731_v53  ;;  %v2094_v58 = vsub.f32 %v2070_v37, %v4733_v27  ;;  %3737 = vpow2.f32 %v2101_v50 }
 0x42a   : > { %3739 = vpow2.f32 %v2105_v39 }
 0x42b   : > { %v2103_v24 = vmul.f32 1.442695, %v2094_v58  ;;  %v2107_v61 = vmul.f32 1.442695, %v2096_v42 }
 0x42c   : > { %v4737_v29 = vpop.xlane.xlu1 %2087  ;;  %v4739_v59 = vpop.xlane.xlu0 %2085 }
 0x42d   : > { %v2098_v62 = vsub.f32 %v2074_v35, %v4737_v29  ;;  %v2097_v0 = vsub.f32 %v2073_v46, %v4739_v59  ;;  %3741 = vpow2.f32 %v2103_v24 }
 0x42e   : > { %3743 = vpow2.f32 %v2107_v61 }
 0x42f   : > { %v2109_v1 = vmul.f32 1.442695, %v2097_v0  ;;  %v2111_v63 = vmul.f32 1.442695, %v2098_v62 }
 0x430   : > { %v4743_v3 = vpop.xlane.xlu1 %2091  ;;  %v4745_v4 = vpop.xlane.xlu0 %2089 }
 0x431   : > { %v2099_v8 = vsub.f32 %v2075_v48, %v4745_v4  ;;  %3745 = vpow2.f32 %v2109_v1  ;;  %v2100_v9 = vsub.f32 %v2076_v47, %v4743_v3 }
 0x432   : > { %3747 = vpow2.f32 %v2111_v63 }
 0x433   : > { %v2113_v12 = vmul.f32 1.442695, %v2099_v8  ;;  %v3738_v14 = vpop.eup %3737  ;;  %v2115_v54 = vmul.f32 1.442695, %v2100_v9 }
 0x434   : > { %2117 = vadd.xlane.f32.xlu0 %v3738_v14  ;;  %v3740_v17 = vpop.eup %3739 }
 0x435   : > { %3749 = vpow2.f32 %v2113_v12 }
 0x436   : > { %3751 = vpow2.f32 %v2115_v54 }
 0x437   : > { %v3742_v19 = vpop.eup %3741 }
 0x438   : > { %2121 = vadd.xlane.f32.xlu0 %v3740_v17  ;;  %2119 = vadd.xlane.f32.xlu1 %v3742_v19  ;;  %v3744_v7 = vpop.eup %3743 }
 0x43b   : > { %v3746_v23 = vpop.eup %3745 }
 0x43c   : > { %2123 = vadd.xlane.f32.xlu1 %v3744_v7  ;;  %2125 = vadd.xlane.f32.xlu0 %v3746_v23  ;;  %v3748_v25 = vpop.eup %3747 }
 0x43f   : > { %v3750_v28 = vpop.eup %3749 }
 0x440   : > { %2127 = vadd.xlane.f32.xlu1 %v3748_v25  ;;  %2129 = vadd.xlane.f32.xlu0 %v3750_v28  ;;  %v3752_v51 = vpop.eup %3751 }
 0x444   : > { %2131 = vadd.xlane.f32.xlu1 %v3752_v51 }
 0x4c1   : > { %v2118_v30 = vpop.xlane.xlu0 %2117 }
 0x4c5   : > { %v2120_v31 = vpop.xlane.xlu1 %2119  ;;  %v2122_v43 = vpop.xlane.xlu0 %2121 }
 0x4c6   : > { %3753 = vlog2.f32 %v2120_v31 }
 0x4c7   : > { %3755 = vlog2.f32 %v2118_v30 }
 0x4c8   : > { %3757 = vlog2.f32 %v2122_v43 }
 0x4c9   : > { %v2124_v32 = vpop.xlane.xlu1 %2123  ;;  %v2126_v34 = vpop.xlane.xlu0 %2125 }
 0x4ca   : > { %3759 = vlog2.f32 %v2124_v32 }
 0x4cb   : > { %3761 = vlog2.f32 %v2126_v34 }
 0x4cd   : > { %v2128_v37 = vpop.xlane.xlu1 %2127  ;;  %v2130_v35 = vpop.xlane.xlu0 %2129 }
 0x4ce   : > { %3763 = vlog2.f32 %v2128_v37 }
 0x4cf   : > { %3765 = vlog2.f32 %v2130_v35 }
 0x4d0   : > { %v3754_v46 = vpop.eup %3753 }
 0x4d1   : > { %v2132_v47 = vpop.xlane.xlu1 %2131  ;;  %v3756_v48 = vpop.eup %3755  ;;  %v2136_v50 = vmul.f32 0.6931472, %v3754_v46 }
 0x4d2   : > { %3767 = vlog2.f32 %v2132_v47  ;;  %v3758_v15 = vpop.eup %3757  ;;  %v2134_v42 = vmul.f32 0.6931472, %v3756_v48 }
 0x4d3   : > { %v2138_v24 = vmul.f32 0.6931472, %v3758_v15  ;;  %v2150_v0 = vadd.f32 %v2136_v50, %v4733_v27 }
 0x4d4   : > { %v3760_v57 = vpop.eup %3759  ;;  %v2149_v9 = vadd.f32 %v2134_v42, %v4727_v49 }
 0x4d5   : > { %v3762_v39 = vpop.eup %3761  ;;  %v2140_v61 = vmul.f32 0.6931472, %v3760_v57  ;;  %v2151_v14 = vadd.f32 %v2138_v24, %v4725_v18  ;;  %v2158_v7 = vsub.f32 -4.276666, %v2150_v0 }
 0x4d6   : > { %v2142_v58 = vmul.f32 0.6931472, %v3762_v39  ;;  %v2157_v51 = vsub.f32 -4.276666, %v2149_v9 }
 0x4d7   : > { %v2152_v54 = vadd.f32 %v2140_v61, %v4731_v53  ;;  %v2166_v18 = vadd.f32 %v2158_v7, %v4659_v38 }
 0x4d8   : > { %v3764_v62 = vpop.eup %3763  ;;  %v2153_v63 = vadd.f32 %v2142_v58, %v4739_v59  ;;  %v2159_v59 = vsub.f32 -4.276666, %v2151_v14 }
 0x4d9   : > { %v3766_v1 = vpop.eup %3765  ;;  %v2144_v8 = vmul.f32 0.6931472, %v3764_v62  ;;  %v2160_v31 = vsub.f32 -4.276666, %v2152_v54 }
 0x4da   : > { %v2146_v12 = vmul.f32 0.6931472, %v3766_v1  ;;  %v2161_v25 = vsub.f32 -4.276666, %v2153_v63  ;;  %v2167_v34 = vadd.f32 %v2159_v59, %v4677_v20 }
 0x4db   : > { %v2154_v17 = vadd.f32 %v2144_v8, %v4737_v29  ;;  %v2168_v37 = vadd.f32 %v2160_v31, %v4681_v21 }
 0x4dc   : > { %v3768_v19 = vpop.eup %3767  ;;  %v2155_v23 = vadd.f32 %v2146_v12, %v4745_v4  ;;  %v2169_v53 = vadd.f32 %v2161_v25, %v4663_v16  ;;  %v2165_v4 = vadd.f32 %v2157_v51, %v4671_v44 }
 0x4dd   : > { %v2162_v28 = vsub.f32 -4.276666, %v2154_v17  ;;  %v2148_v27 = vmul.f32 0.6931472, %v3768_v19 }
 0x4de   : > { %v2163_v30 = vsub.f32 -4.276666, %v2155_v23  ;;  %v2173_v47 = vmax.f32 %v2165_v4, %v2169_v53 }
 0x4df   : > { %v2170_v49 = vadd.f32 %v2162_v28, %v4653_v26  ;;  %v2156_v43 = vadd.f32 %v2148_v27, %v4743_v3 }
 0x4e0   : > { %v2171_v29 = vadd.f32 %v2163_v30, %v4667_v13 }
 0x4e1   : > { %v2164_v32 = vsub.f32 -4.276666, %v2156_v43  ;;  %v2174_v35 = vmax.f32 %v2166_v18, %v2170_v49 }
 0x4e2   : > { %v2175_v48 = vmax.f32 %v2167_v34, %v2171_v29 }
 0x4e3   : > { %v2172_v46 = vadd.f32 %v2164_v32, %v4685_v22  ;;  %v2177_v3 = vmax.f32 %v2173_v47, %v2174_v35 }
 0x4e5   : > { %v2176_v15 = vmax.f32 %v2168_v37, %v2172_v46 }
 0x4e7   : > { %v2178_v57 = vmax.f32 %v2175_v48, %v2176_v15 }
 0x4e9   : > { %v2179_v50 = vmax.f32 %v2177_v3, %v2178_v57 }
 0x4eb   : > { %v2180_v39 = vrot.slane %v2179_v50, 4 }
 0x4ed   : > { %v2181_v42 = vmax.f32 %v2179_v50, %v2180_v39 }
 0x4ef   : > { %v2182_v58 = vrot.slane %v2181_v42, 2 }
 0x4f1   : > { %v2183_v24 = vmax.f32 %v2181_v42, %v2182_v58 }
 0x4f3   : > { %v2184_v61 = vrot.slane %v2183_v24, 1 }
 0x4f5   : > { %v2185_v62 = vmax.f32 %v2183_v24, %v2184_v61 }
 0x4f7   : > { %v2186_v0 = vsub.f32 %v2165_v4, %v2185_v62  ;;  %v2187_v1 = vsub.f32 %v2166_v18, %v2185_v62  ;;  %v2188_v63 = vsub.f32 %v2167_v34, %v2185_v62  ;;  %v2189_v8 = vsub.f32 %v2168_v37, %v2185_v62 }
 0x4f8   : > { %v2190_v54 = vsub.f32 %v2169_v53, %v2185_v62  ;;  %v2191_v19 = vsub.f32 %v2170_v49, %v2185_v62  ;;  %v2193_v7 = vsub.f32 %v2172_v46, %v2185_v62  ;;  %v2192_v28 = vsub.f32 %v2171_v29, %v2185_v62 }
 0x4f9   : > { %v2194_v9 = vmul.f32 1.442695, %v2186_v0  ;;  %v2196_v12 = vmul.f32 1.442695, %v2187_v1  ;;  %v2198_v14 = vmul.f32 1.442695, %v2188_v63 }
 0x4fa   : > { %v2200_v17 = vmul.f32 1.442695, %v2189_v8  ;;  %v2202_v23 = vmul.f32 1.442695, %v2190_v54  ;;  %v2204_v25 = vmul.f32 1.442695, %v2191_v19 }
 0x4fb   : > { %3769 = vpow2.f32 %v2194_v9  ;;  %v2208_v27 = vmul.f32 1.442695, %v2193_v7  ;;  %v2206_v51 = vmul.f32 1.442695, %v2192_v28 }
 0x4fc   : > { %3771 = vpow2.f32 %v2196_v12 }
 0x4fd   : > { %3773 = vpow2.f32 %v2198_v14 }
 0x4fe   : > { %3775 = vpow2.f32 %v2200_v17 }
 0x4ff   : > { %3777 = vpow2.f32 %v2202_v23 }
 0x500   : > { %3779 = vpow2.f32 %v2204_v25 }
 0x501   : > { %3781 = vpow2.f32 %v2208_v27 }
 0x502   : > { %3783 = vpow2.f32 %v2206_v51 }
 0x505   : > { %v3770_v30 = vpop.eup %3769 }
 0x506   : > { %v3772_v59 = vpop.eup %3771 }
 0x507   : > { %v3774_v31 = vpop.eup %3773  ;;  %v3386_v43 = vpack.c.bf16 %v3772_v59, %v3770_v30 }
 0x508   : > { %v3776_v18 = vpop.eup %3775 }
 0x509   : > { %3387 = vmatpush3.bf16.msra.mxu1 %v3386_v43  ;;  %v3778_v49 = vpop.eup %3777  ;;  %v3389_v53 = vpack.c.bf16 %v3776_v18, %v3774_v31 }
 0x50a   : > { %3388 = vmatprep.subr.bf16.mxu1 %v3914_v6  ;;  %v3780_v32 = vpop.eup %3779 }
 0x50b   : > { %v3782_v29 = vpop.eup %3781  ;;  %v3392_v4 = vpack.c.bf16 %v3780_v32, %v3778_v49 }
 0x50c   : > { %v3784_v34 = vpop.eup %3783 }
 0x50d   : > { %3390 = vmatpush3.bf16.msra.mxu1 %v3389_v53  ;;  %v3395_v37 = vpack.c.bf16 %v3782_v29, %v3784_v34 }
 0x50e   : > { %3391 = vmatprep.subr.bf16.mxu1 %v3914_v6 }
 0x511   : > { %3393 = vmatpush3.bf16.msra.mxu1 %v3392_v4 }
 0x512   : > { %3394 = vmatprep.subr.bf16.mxu1 %v3914_v6 }
 0x515   : > { %3396 = vmatpush3.bf16.msra.mxu1 %v3395_v37 }
 0x516   : > { %3397 = vmatprep.subr.bf16.mxu1 %v3914_v6 }
 0x518   : > { %3312 = vmatmul.mubr.msk.f32.vlgmr.msra.gmra.mrb[62].mxu1 %vm1986_vm3, %v3917_v56 }
 0x519   : > { %3330 = vmatprep.mubr.msk.f32.mxu1 %vm3915_vm1, %v3916_v33 }
 0x5eb   : > { %v2276_v35 = vpop.f32.mrb[62].mxu1 }
 0x5ec   : > { %3785 = vlog2.f32 %v2276_v35  ;;  %v3313_v46 = vpop.f32.mrb[63].mxu1 }
 0x5f6   : > { %v3786_v47 = vpop.eup %3785 }
 0x5f7   : > { %v2281_v48 = vmul.f32 0.6931472, %v3786_v47 }
 0x5f9   : > { %v2282_v15 = vadd.f32 %v2281_v48, %v2185_v62 }
 0x5fb   : > { %v2283_v3 = vsub.f32 %v4711_v10, %v2282_v15 }
 0x5fd   : > { %v2284_v57 = vsel %vm1918_vm2, %v2283_v3, 0.0 }
 0x5fe   : > { %v2288_v50 = vrot.slane %v2284_v57, %v4282_v40 }
 0x600   : > { %v2290_v39 = vadd.f32 %v2288_v50, %v4659_v38  ;;  %v2289_v42 = vadd.f32 %v2288_v50, %v4671_v44  ;;  %v2292_v33 = vadd.f32 %v2288_v50, %v4681_v21  ;;  %v2291_v58 = vadd.f32 %v2288_v50, %v4677_v20 }
 0x601   : > { %v2294_v24 = vadd.f32 %v2288_v50, %v4653_v26  ;;  %v2293_v61 = vadd.f32 %v2288_v50, %v4663_v16  ;;  %v2296_v62 = vadd.f32 %v2288_v50, %v4685_v22  ;;  %v2295_v0 = vadd.f32 %v2288_v50, %v4667_v13 }
 0x602   : > { %2299 = vmax.xlane.f32.xlu1 %v2290_v39  ;;  %2297 = vmax.xlane.f32.xlu0 %v2289_v42 }
 0x606   : > { %2303 = vmax.xlane.f32.xlu1 %v2292_v33  ;;  %2301 = vmax.xlane.f32.xlu0 %v2291_v58 }
 0x60a   : > { %2307 = vmax.xlane.f32.xlu1 %v2294_v24  ;;  %2305 = vmax.xlane.f32.xlu0 %v2293_v61 }
 0x60e   : > { %2311 = vmax.xlane.f32.xlu1 %v2296_v62  ;;  %2309 = vmax.xlane.f32.xlu0 %v2295_v0 }
 0x68f   : > { %v4785_v1 = vpop.xlane.xlu1 %2299  ;;  %v4787_v63 = vpop.xlane.xlu0 %2297 }
 0x690   : > { %v2314_v8 = vsub.f32 %v2290_v39, %v4785_v1  ;;  %v2313_v9 = vsub.f32 %v2289_v42, %v4787_v63 }
 0x692   : > { %v2323_v12 = vmul.f32 1.442695, %v2314_v8  ;;  %v2321_v14 = vmul.f32 1.442695, %v2313_v9 }
 0x693   : > { %v4791_v54 = vpop.xlane.xlu1 %2303  ;;  %v4793_v17 = vpop.xlane.xlu0 %2301 }
 0x694   : > { %3787 = vpow2.f32 %v2323_v12  ;;  %v2316_v19 = vsub.f32 %v2292_v33, %v4791_v54  ;;  %v2315_v7 = vsub.f32 %v2291_v58, %v4793_v17 }
 0x695   : > { %3789 = vpow2.f32 %v2321_v14 }
 0x696   : > { %v2327_v23 = vmul.f32 1.442695, %v2316_v19  ;;  %v2325_v25 = vmul.f32 1.442695, %v2315_v7 }
 0x697   : > { %v4797_v28 = vpop.xlane.xlu1 %2307  ;;  %v4799_v27 = vpop.xlane.xlu0 %2305 }
 0x698   : > { %3791 = vpow2.f32 %v2327_v23  ;;  %v2318_v51 = vsub.f32 %v2294_v24, %v4797_v28  ;;  %v2317_v30 = vsub.f32 %v2293_v61, %v4799_v27 }
 0x699   : > { %3793 = vpow2.f32 %v2325_v25 }
 0x69a   : > { %v2331_v59 = vmul.f32 1.442695, %v2318_v51  ;;  %v2329_v31 = vmul.f32 1.442695, %v2317_v30 }
 0x69b   : > { %v4803_v43 = vpop.xlane.xlu1 %2311  ;;  %v4805_v18 = vpop.xlane.xlu0 %2309 }
 0x69c   : > { %3795 = vpow2.f32 %v2331_v59  ;;  %v2320_v49 = vsub.f32 %v2296_v62, %v4803_v43  ;;  %v2319_v53 = vsub.f32 %v2295_v0, %v4805_v18 }
 0x69d   : > { %3797 = vpow2.f32 %v2329_v31 }
 0x69e   : > { %v3788_v32 = vpop.eup %3787  ;;  %v2335_v29 = vmul.f32 1.442695, %v2320_v49  ;;  %v2333_v4 = vmul.f32 1.442695, %v2319_v53 }
 0x69f   : > { %v3790_v34 = vpop.eup %3789  ;;  %2339 = vadd.xlane.f32.xlu1 %v3788_v32 }
 0x6a0   : > { %3799 = vpow2.f32 %v2335_v29  ;;  %2337 = vadd.xlane.f32.xlu0 %v3790_v34 }
 0x6a1   : > { %3801 = vpow2.f32 %v2333_v4 }
 0x6a2   : > { %v3792_v37 = vpop.eup %3791 }
 0x6a3   : > { %v3794_v35 = vpop.eup %3793  ;;  %2343 = vadd.xlane.f32.xlu1 %v3792_v37 }
 0x6a4   : > { %2341 = vadd.xlane.f32.xlu0 %v3794_v35 }
 0x6a6   : > { %v3796_v46 = vpop.eup %3795 }
 0x6a7   : > { %v3798_v47 = vpop.eup %3797  ;;  %2347 = vadd.xlane.f32.xlu1 %v3796_v46 }
 0x6a8   : > { %2345 = vadd.xlane.f32.xlu0 %v3798_v47 }
 0x6aa   : > { %v3800_v48 = vpop.eup %3799 }
 0x6ab   : > { %v3802_v15 = vpop.eup %3801  ;;  %2351 = vadd.xlane.f32.xlu1 %v3800_v48 }
 0x6ac   : > { %2349 = vadd.xlane.f32.xlu0 %v3802_v15 }
 0x72c   : > { %v2340_v3 = vpop.xlane.xlu1 %2339 }
 0x72d   : > { %v2338_v57 = vpop.xlane.xlu0 %2337  ;;  %3803 = vlog2.f32 %v2340_v3 }
 0x72e   : > { %3805 = vlog2.f32 %v2338_v57 }
 0x730   : > { %v2344_v50 = vpop.xlane.xlu1 %2343 }
 0x731   : > { %3807 = vlog2.f32 %v2344_v50  ;;  %v2342_v39 = vpop.xlane.xlu0 %2341 }
 0x732   : > { %3809 = vlog2.f32 %v2342_v39 }
 0x734   : > { %v2348_v42 = vpop.xlane.xlu1 %2347 }
 0x735   : > { %3811 = vlog2.f32 %v2348_v42  ;;  %v2346_v33 = vpop.xlane.xlu0 %2345 }
 0x736   : > { %3813 = vlog2.f32 %v2346_v33 }
 0x737   : > { %v3804_v24 = vpop.eup %3803 }
 0x738   : > { %v2352_v58 = vpop.xlane.xlu1 %2351  ;;  %v3806_v62 = vpop.eup %3805  ;;  %v2356_v9 = vmul.f32 0.6931472, %v3804_v24 }
 0x739   : > { %3815 = vlog2.f32 %v2352_v58  ;;  %v2350_v61 = vpop.xlane.xlu0 %2349  ;;  %v2354_v12 = vmul.f32 0.6931472, %v3806_v62 }
 0x73a   : > { %3817 = vlog2.f32 %v2350_v61  ;;  %v2370_v25 = vadd.f32 %v2356_v9, %v4785_v1 }
 0x73b   : > { %v3808_v0 = vpop.eup %3807  ;;  %v2369_v30 = vadd.f32 %v2354_v12, %v4787_v63 }
 0x73c   : > { %v3810_v8 = vpop.eup %3809  ;;  %v2360_v14 = vmul.f32 0.6931472, %v3808_v0  ;;  %v2378_v34 = vsub.f32 -4.276666, %v2370_v25 }
 0x73d   : > { %v2358_v7 = vmul.f32 0.6931472, %v3810_v8  ;;  %v2377_v46 = vsub.f32 -4.276666, %v2369_v30 }
 0x73e   : > { %v2372_v31 = vadd.f32 %v2360_v14, %v4791_v54 }
 0x73f   : > { %v3812_v19 = vpop.eup %3811  ;;  %v2371_v32 = vadd.f32 %v2358_v7, %v4793_v17  ;;  %v2385_v57 = vadd.f32 %v2377_v46, %v4671_v44 }
 0x740   : > { %v3814_v23 = vpop.eup %3813  ;;  %v2364_v51 = vmul.f32 0.6931472, %v3812_v19  ;;  %v2380_v48 = vsub.f32 -4.276666, %v2372_v31 }
 0x741   : > { %v2362_v59 = vmul.f32 0.6931472, %v3814_v23  ;;  %v2379_v15 = vsub.f32 -4.276666, %v2371_v32 }
 0x742   : > { %v2374_v49 = vadd.f32 %v2364_v51, %v4797_v28  ;;  %v2388_v39 = vadd.f32 %v2380_v48, %v4681_v21 }
 0x743   : > { %v3816_v53 = vpop.eup %3815  ;;  %v2373_v29 = vadd.f32 %v2362_v59, %v4799_v27  ;;  %v2386_v27 = vadd.f32 %v2378_v34, %v4659_v38  ;;  %v2387_v33 = vadd.f32 %v2379_v15, %v4677_v20 }
 0x744   : > { %v3818_v4 = vpop.eup %3817  ;;  %v2382_v37 = vsub.f32 -4.276666, %v2374_v49  ;;  %v2368_v35 = vmul.f32 0.6931472, %v3816_v53 }
 0x745   : > { %v2381_v47 = vsub.f32 -4.276666, %v2373_v29  ;;  %v2366_v1 = vmul.f32 0.6931472, %v3818_v4 }
 0x746   : > { %v2376_v63 = vadd.f32 %v2368_v35, %v4803_v43  ;;  %v2390_v54 = vadd.f32 %v2382_v37, %v4653_v26 }
 0x747   : > { %v2389_v28 = vadd.f32 %v2381_v47, %v4663_v16  ;;  %v2375_v3 = vadd.f32 %v2366_v1, %v4805_v18 }
 0x748   : > { %v2384_v17 = vsub.f32 -4.276666, %v2376_v63  ;;  %v2394_v43 = vmax.f32 %v2386_v27, %v2390_v54 }
 0x749   : > { %v2383_v50 = vsub.f32 -4.276666, %v2375_v3  ;;  %v2393_v58 = vmax.f32 %v2385_v57, %v2389_v28 }
 0x74a   : > { %v2392_v42 = vadd.f32 %v2384_v17, %v4685_v22 }
 0x74b   : > { %v2391_v24 = vadd.f32 %v2383_v50, %v4667_v13  ;;  %v2397_v0 = vmax.f32 %v2393_v58, %v2394_v43 }
 0x74c   : > { %v2396_v61 = vmax.f32 %v2388_v39, %v2392_v42 }
 0x74d   : > { %v2395_v62 = vmax.f32 %v2387_v33, %v2391_v24 }
 0x74f   : > { %v2398_v18 = vmax.f32 %v2395_v62, %v2396_v61 }
 0x751   : > { %v2399_v8 = vmax.f32 %v2397_v0, %v2398_v18 }
 0x753   : > { %v2400_v9 = vrot.slane %v2399_v8, 4 }
 0x755   : > { %v2401_v12 = vmax.f32 %v2399_v8, %v2400_v9 }
 0x757   : > { %v2402_v14 = vrot.slane %v2401_v12, 2 }
 0x759   : > { %v2403_v19 = vmax.f32 %v2401_v12, %v2402_v14 }
 0x75b   : > { %v2404_v7 = vrot.slane %v2403_v19, 1 }
 0x75d   : > { %v2405_v23 = vmax.f32 %v2403_v19, %v2404_v7 }
 0x75f   : > { %v2406_v25 = vsub.f32 %v2385_v57, %v2405_v23  ;;  %v2407_v51 = vsub.f32 %v2386_v27, %v2405_v23  ;;  %v2408_v30 = vsub.f32 %v2387_v33, %v2405_v23  ;;  %v2409_v59 = vsub.f32 %v2388_v39, %v2405_v23 }
 0x760   : > { %v2410_v32 = vsub.f32 %v2389_v28, %v2405_v23  ;;  %v2411_v4 = vsub.f32 %v2390_v54, %v2405_v23  ;;  %v2412_v34 = vsub.f32 %v2391_v24, %v2405_v23  ;;  %v2413_v46 = vsub.f32 %v2392_v42, %v2405_v23 }
 0x761   : > { %v2414_v31 = vmul.f32 1.442695, %v2406_v25  ;;  %v2416_v49 = vmul.f32 1.442695, %v2407_v51  ;;  %v2418_v53 = vmul.f32 1.442695, %v2408_v30 }
 0x762   : > { %v2420_v29 = vmul.f32 1.442695, %v2409_v59  ;;  %v2422_v37 = vmul.f32 1.442695, %v2410_v32  ;;  %v2424_v35 = vmul.f32 1.442695, %v2411_v4 }
 0x763   : > { %3819 = vpow2.f32 %v2414_v31  ;;  %v2426_v47 = vmul.f32 1.442695, %v2412_v34  ;;  %v2428_v1 = vmul.f32 1.442695, %v2413_v46 }
 0x764   : > { %3821 = vpow2.f32 %v2416_v49 }
 0x765   : > { %3823 = vpow2.f32 %v2418_v53 }
 0x766   : > { %3825 = vpow2.f32 %v2420_v29 }
 0x767   : > { %3827 = vpow2.f32 %v2422_v37 }
 0x768   : > { %3829 = vpow2.f32 %v2424_v35 }
 0x769   : > { %3831 = vpow2.f32 %v2426_v47 }
 0x76a   : > { %3833 = vpow2.f32 %v2428_v1 }
 0x76d   : > { %v3820_v48 = vpop.eup %3819 }
 0x76e   : > { %v3822_v63 = vpop.eup %3821 }
 0x76f   : > { %v3824_v15 = vpop.eup %3823  ;;  %v3398_v28 = vpack.c.bf16 %v3822_v63, %v3820_v48 }
 0x770   : > { %v3826_v3 = vpop.eup %3825 }
 0x771   : > { %3399 = vmatpush3.bf16.msra.mxu1 %v3398_v28  ;;  %v3828_v54 = vpop.eup %3827  ;;  %v3401_v17 = vpack.c.bf16 %v3826_v3, %v3824_v15 }
 0x772   : > { %3400 = vmatprep.subr.bf16.mxu1 %v3914_v6  ;;  %v3830_v27 = vpop.eup %3829 }
 0x773   : > { %v3832_v57 = vpop.eup %3831  ;;  %v3404_v50 = vpack.c.bf16 %v3830_v27, %v3828_v54 }
 0x774   : > { %v3834_v39 = vpop.eup %3833 }
 0x775   : > { %3402 = vmatpush3.bf16.msra.mxu1 %v3401_v17  ;;  %v3407_v42 = vpack.c.bf16 %v3834_v39, %v3832_v57 }
 0x776   : > { %3403 = vmatprep.subr.bf16.mxu1 %v3914_v6 }
 0x779   : > { %3405 = vmatpush3.bf16.msra.mxu1 %v3404_v50 }
 0x77a   : > { %3406 = vmatprep.subr.bf16.mxu1 %v3914_v6 }
 0x77d   : > { %3408 = vmatpush3.bf16.msra.mxu1 %v3407_v42 }
 0x780   : > { %3331 = vmatmul.mubr.msk.f32.vlgmr.msra.gmra.mrb[64].mxu1 %vm1986_vm3, %v3917_v56 }
 0x853   : > { %v2496_v33 = vpop.f32.mrb[64].mxu1 }
 0x854   : > { %3835 = vlog2.f32 %v2496_v33  ;;  %v3332_v43 = vpop.f32.mrb[65].mxu1 }
 0x85e   : > { %v3836_v58 = vpop.eup %3835 }
 0x85f   : > { %v2501_v24 = vmul.f32 0.6931472, %v3836_v58 }
 0x861   : > { %v2502_v61 = vadd.f32 %v2501_v24, %v2405_v23 }
 0x863   : > { %v2503_v62 = vsub.f32 %v4711_v10, %v2502_v61 }
 0x865   : > { %v2504_v0 = vsel %vm1918_vm2, %v2503_v62, 0.0 }
 0x866   : > { %v2508_v18 = vrot.slane %v2504_v0, %v4282_v40 }
 0x868   : > { %v4835_v6 = vadd.f32 %v2508_v18, %v4659_v38  ;;  %v4838_v8 = vadd.f32 %v2508_v18, %v4671_v44  ;;  %v4843_v56 = vadd.f32 %v2508_v18, %v4681_v21  ;;  %v4846_v10 = vadd.f32 %v2508_v18, %v4677_v20 }
 0x869   : > { %v4851_v40 = vadd.f32 %v2508_v18, %v4653_v26  ;;  %v4854_v5 = vadd.f32 %v2508_v18, %v4663_v16  ;;  %v4859_v38 = vadd.f32 %v2508_v18, %v4685_v22  ;;  %v4862_v44 = vadd.f32 %v2508_v18, %v4667_v13 }
 0x86a   : > { %2519 = vmax.xlane.f32.xlu1 %v4835_v6  ;;  %2517 = vmax.xlane.f32.xlu0 %v4838_v8 }
 0x86e   : > { %2523 = vmax.xlane.f32.xlu1 %v4843_v56  ;;  %2521 = vmax.xlane.f32.xlu0 %v4846_v10 }
 0x872   : > { %2527 = vmax.xlane.f32.xlu1 %v4851_v40  ;;  %2525 = vmax.xlane.f32.xlu0 %v4854_v5 }
 0x876   : > { %2531 = vmax.xlane.f32.xlu1 %v4859_v38  ;;  %2529 = vmax.xlane.f32.xlu0 %v4862_v44 }
 0x8f7   : > { %v4866_v20 = vpop.xlane.xlu1 %2519  ;;  %v4868_v26 = vpop.xlane.xlu0 %2517 }
 0x8f8   : > { %v2534_v16 = vsub.f32 %v4835_v6, %v4866_v20  ;;  %v2533_v21 = vsub.f32 %v4838_v8, %v4868_v26 }
 0x8fa   : > { %v2543_v9 = vmul.f32 1.442695, %v2534_v16  ;;  %v2541_v22 = vmul.f32 1.442695, %v2533_v21 }
 0x8fb   : > { %v4874_v12 = vpop.xlane.xlu1 %2523  ;;  %v4876_v13 = vpop.xlane.xlu0 %2521 }
 0x8fc   : > { %3837 = vpow2.f32 %v2543_v9  ;;  %v2536_v14 = vsub.f32 %v4843_v56, %v4874_v12  ;;  %v2535_v19 = vsub.f32 %v4846_v10, %v4876_v13 }
 0x8fd   : > { %3839 = vpow2.f32 %v2541_v22 }
 0x8fe   : > { %v2547_v7 = vmul.f32 1.442695, %v2536_v14  ;;  %v2545_v23 = vmul.f32 1.442695, %v2535_v19 }
 0x8ff   : > { %v4882_v25 = vpop.xlane.xlu1 %2527  ;;  %v4884_v51 = vpop.xlane.xlu0 %2525 }
 0x900   : > { %3841 = vpow2.f32 %v2547_v7  ;;  %v2538_v30 = vsub.f32 %v4851_v40, %v4882_v25  ;;  %v2537_v59 = vsub.f32 %v4854_v5, %v4884_v51 }
 0x901   : > { %3843 = vpow2.f32 %v2545_v23 }
 0x902   : > { %v2551_v31 = vmul.f32 1.442695, %v2538_v30  ;;  %v2549_v49 = vmul.f32 1.442695, %v2537_v59 }
 0x903   : > { %v4890_v53 = vpop.xlane.xlu1 %2531  ;;  %v4892_v32 = vpop.xlane.xlu0 %2529 }
 0x904   : > { %3845 = vpow2.f32 %v2551_v31  ;;  %v2540_v29 = vsub.f32 %v4859_v38, %v4890_v53  ;;  %v2539_v4 = vsub.f32 %v4862_v44, %v4892_v32 }
 0x905   : > { %3847 = vpow2.f32 %v2549_v49 }
 0x906   : > { %v3838_v34 = vpop.eup %3837  ;;  %v2555_v37 = vmul.f32 1.442695, %v2540_v29  ;;  %v2553_v35 = vmul.f32 1.442695, %v2539_v4 }
 0x907   : > { %v3840_v46 = vpop.eup %3839  ;;  %2559 = vadd.xlane.f32.xlu1 %v3838_v34 }
 0x908   : > { %3849 = vpow2.f32 %v2555_v37  ;;  %2557 = vadd.xlane.f32.xlu0 %v3840_v46 }
 0x909   : > { %3851 = vpow2.f32 %v2553_v35 }
 0x90a   : > { %v3842_v47 = vpop.eup %3841 }
 0x90b   : > { %v3844_v1 = vpop.eup %3843  ;;  %2563 = vadd.xlane.f32.xlu1 %v3842_v47 }
 0x90c   : > { %2561 = vadd.xlane.f32.xlu0 %v3844_v1 }
 0x90e   : > { %v3846_v48 = vpop.eup %3845 }
 0x90f   : > { %v3848_v63 = vpop.eup %3847  ;;  %2567 = vadd.xlane.f32.xlu1 %v3846_v48 }
 0x910   : > { %2565 = vadd.xlane.f32.xlu0 %v3848_v63 }
 0x912   : > { %v3850_v15 = vpop.eup %3849 }
 0x913   : > { %v3852_v28 = vpop.eup %3851  ;;  %2571 = vadd.xlane.f32.xlu1 %v3850_v15 }
 0x914   : > { %2569 = vadd.xlane.f32.xlu0 %v3852_v28 }
 0x941   : > { %2645 = vxpose.xlu0.b32.start [1/8] (short) %v4633_v45, 128 }
 0x945   : > { %2646 = vxpose.xlu0.b32.cont [2/8] (short) %v4635_v36, 128 }
 0x949   : > { %2647 = vxpose.xlu0.b32.cont [3/8] (short) %v4637_v52, 128 }
 0x94d   : > { %2648 = vxpose.xlu0.b32.cont [4/8] (short) %v4639_v55, 128 }
 0x951   : > { %2649 = vxpose.xlu0.b32.cont [5/8] (short) %v4641_v60, 128 }
 0x955   : > { %2650 = vxpose.xlu0.b32.cont [6/8] (short) %v4643_v2, 128 }
 0x959   : > { %2651 = vxpose.xlu0.b32.cont [7/8] (short) %v4649_v11, 128 }
 0x95d   : > { %2652 = vxpose.xlu0.b32.end [8/8] (short) %v4655_v41, 128 }
 0x994   : > { %v2560_v3 = vpop.xlane.xlu1 %2559 }
 0x995   : > { %3853 = vlog2.f32 %v2560_v3  ;;  %v2558_v54 = vpop.xlane.xlu0 %2557 }
 0x996   : > { %3855 = vlog2.f32 %v2558_v54 }
 0x998   : > { %v2564_v17 = vpop.xlane.xlu1 %2563 }
 0x999   : > { %3857 = vlog2.f32 %v2564_v17  ;;  %v2562_v45 = vpop.xlane.xlu0 %2561 }
 0x99a   : > { %3859 = vlog2.f32 %v2562_v45 }
 0x99c   : > { %v2568_v36 = vpop.xlane.xlu1 %2567 }
 0x99d   : > { %3861 = vlog2.f32 %v2568_v36  ;;  %v2566_v52 = vpop.xlane.xlu0 %2565 }
 0x99e   : > { %3863 = vlog2.f32 %v2566_v52 }
 0x99f   : > { %v3854_v55 = vpop.eup %3853 }
 0x9a0   : > { %v3856_v60 = vpop.eup %3855  ;;  %v2576_v27 = vmul.f32 0.6931472, %v3854_v55  ;;  %v2572_v2 = vpop.xlane.xlu1 %2571 }
 0x9a1   : > { %v2574_v57 = vmul.f32 0.6931472, %v3856_v60  ;;  %3865 = vlog2.f32 %v2572_v2  ;;  %v2570_v11 = vpop.xlane.xlu0 %2569 }
 0x9a2   : > { %v2590_v41 = vadd.f32 %v2576_v27, %v4866_v20  ;;  %3867 = vlog2.f32 %v2570_v11 }
 0x9a3   : > { %v3858_v50 = vpop.eup %3857  ;;  %v2589_v39 = vadd.f32 %v2574_v57, %v4868_v26 }
 0x9a4   : > { %v3860_v42 = vpop.eup %3859  ;;  %v2598_v33 = vsub.f32 -4.276666, %v2590_v41  ;;  %v2580_v43 = vmul.f32 0.6931472, %v3858_v50 }
 0x9a5   : > { %v2597_v58 = vsub.f32 -4.276666, %v2589_v39  ;;  %v2578_v24 = vmul.f32 0.6931472, %v3860_v42 }
 0x9a6   : > { %v2606_v61 = vadd.f32 %v2598_v33, %v4835_v6  ;;  %v2592_v62 = vadd.f32 %v2580_v43, %v4874_v12 }
 0x9a7   : > { %v3862_v0 = vpop.eup %3861  ;;  %v2605_v18 = vadd.f32 %v2597_v58, %v4838_v8  ;;  %v2591_v16 = vadd.f32 %v2578_v24, %v4876_v13 }
 0x9a8   : > { %v3864_v21 = vpop.eup %3863  ;;  %v3198_v20 = vadd.f32 4.276666, %v2606_v61  ;;  %v2600_v9 = vsub.f32 -4.276666, %v2592_v62  ;;  %v2584_v22 = vmul.f32 0.6931472, %v3862_v0 }
 0x9a9   : > { %v3197_v14 = vadd.f32 4.276666, %v2605_v18  ;;  %v2599_v26 = vsub.f32 -4.276666, %v2591_v16  ;;  %v2582_v19 = vmul.f32 0.6931472, %v3864_v21 }
 0x9aa   : > { %v2623_v7 = vmul.f32 1.442695, %v3198_v20  ;;  %v2608_v23 = vadd.f32 %v2600_v9, %v4843_v56  ;;  %v2594_v30 = vadd.f32 %v2584_v22, %v4882_v25 }
 0x9ab   : > { %v3866_v6 = vpop.eup %3865  ;;  %v2621_v59 = vmul.f32 1.442695, %v3197_v14  ;;  %v2607_v12 = vadd.f32 %v2599_v26, %v4846_v10  ;;  %v2593_v8 = vadd.f32 %v2582_v19, %v4884_v51 }
 0x9ac   : > { %v3868_v31 = vpop.eup %3867  ;;  %3869 = vpow2.f32 %v2623_v7  ;;  %v3200_v13 = vadd.f32 4.276666, %v2608_v23  ;;  %v2602_v49 = vsub.f32 -4.276666, %v2594_v30  ;;  %v2588_v29 = vmul.f32 0.6931472, %v3866_v6 }
 0x9ad   : > { %3871 = vpow2.f32 %v2621_v59  ;;  %v3199_v4 = vadd.f32 4.276666, %v2607_v12  ;;  %v2601_v34 = vsub.f32 -4.276666, %v2593_v8  ;;  %v2586_v37 = vmul.f32 0.6931472, %v3868_v31 }
 0x9ae   : > { %v2627_v35 = vmul.f32 1.442695, %v3200_v13  ;;  %v2610_v56 = vadd.f32 %v2602_v49, %v4851_v40  ;;  %v2596_v25 = vadd.f32 %v2588_v29, %v4890_v53 }
 0x9af   : > { %v2625_v46 = vmul.f32 1.442695, %v3199_v4  ;;  %v2609_v47 = vadd.f32 %v2601_v34, %v4854_v5  ;;  %v2595_v10 = vadd.f32 %v2586_v37, %v4892_v32 }
 0x9b0   : > { %3873 = vpow2.f32 %v2627_v35  ;;  %v3202_v51 = vadd.f32 4.276666, %v2610_v56  ;;  %v2604_v1 = vsub.f32 -4.276666, %v2596_v25 }
 0x9b1   : > { %3875 = vpow2.f32 %v2625_v46  ;;  %v3201_v48 = vadd.f32 4.276666, %v2609_v47  ;;  %v2603_v63 = vsub.f32 -4.276666, %v2595_v10 }
 0x9b2   : > { %v2631_v15 = vmul.f32 1.442695, %v3202_v51  ;;  %v2612_v28 = vadd.f32 %v2604_v1, %v4859_v38 }
 0x9b3   : > { %v2629_v3 = vmul.f32 1.442695, %v3201_v48  ;;  %v2611_v54 = vadd.f32 %v2603_v63, %v4862_v44 }
 0x9b4   : > { %3877 = vpow2.f32 %v2631_v15  ;;  %v3204_v40 = vadd.f32 4.276666, %v2612_v28 }
 0x9b5   : > { %3879 = vpow2.f32 %v2629_v3  ;;  %v3203_v53 = vadd.f32 4.276666, %v2611_v54 }
 0x9b6   : > { %v3870_v17 = vpop.eup %3869  ;;  %v2635_v5 = vmul.f32 1.442695, %v3204_v40 }
 0x9b7   : > { %v3872_v45 = vpop.eup %3871  ;;  %v2633_v32 = vmul.f32 1.442695, %v3203_v53 }
 0x9b8   : > { %3881 = vpow2.f32 %v2635_v5  ;;  %v3409_v36 = vpack.c.bf16 %v3870_v17, %v3872_v45 }
 0x9b9   : > { %3883 = vpow2.f32 %v2633_v32 }
 0x9ba   : > { %v3874_v52 = vpop.eup %3873  ;;  %3410 = vmatprep.subr.bf16.mxu1 %v3409_v36 }
 0x9bb   : > { %v3876_v55 = vpop.eup %3875  ;;  %3412 = vmatpush3.bf16.msra.mxu1 %v3409_v36 }
 0x9bc   : > { %v3413_v60 = vpack.c.bf16 %v3874_v52, %v3876_v55 }
 0x9be   : > { %v3878_v38 = vpop.eup %3877  ;;  %3414 = vmatprep.subr.bf16.mxu1 %v3413_v60 }
 0x9bf   : > { %v3880_v27 = vpop.eup %3879  ;;  %3416 = vmatpush3.bf16.msra.mxu1 %v3413_v60 }
 0x9c0   : > { %v3417_v44 = vpack.c.bf16 %v3878_v38, %v3880_v27 }
 0x9c1   : > { %v2661_v2 = vpop.trf.xlu0 }
 0x9c2   : > { %v3882_v57 = vpop.eup %3881  ;;  %3418 = vmatprep.subr.bf16.mxu1 %v3417_v44  ;;  %3349 = vmatprep.mubr.msk.f32.mxu1 %vm1986_vm3, %v2661_v2 }
 0x9c3   : > { %v3884_v11 = vpop.eup %3883  ;;  %3420 = vmatpush3.bf16.msra.mxu1 %v3417_v44 }
 0x9c4   : > { %v3421_v41 = vpack.c.bf16 %v3882_v57, %v3884_v11 }
 0x9c5   : > { %v2662_v50 = vpop.trf.xlu0 }
 0x9c6   : > { %3422 = vmatprep.subr.bf16.mxu1 %v3421_v41 }
 0x9c7   : > { %3424 = vmatpush3.bf16.msra.mxu1 %v3421_v41 }
 0x9c9   : > { %v2663_v39 = vpop.trf.xlu0 }
 0x9ca   : > { %3350 = vmatmul.mubr.msk.f32.vlgmr.msra.gmra.mrb[66].mxu1 %vm1986_vm3, %v2662_v50 }
 0x9cb   : > { %3352 = vmatprep.mubr.msk.f32.mxu1 %vm1986_vm3, %v2663_v39 }
 0x9cd   : > { %v2664_v42 = vpop.trf.xlu0 }
 0x9ce   : > { %3353 = vmatmul.mubr.msk.f32.gmra.mrb[68].mxu1 %vm1986_vm3, %v2664_v42 }
 0x9d1   : > { %v2665_v33 = vpop.trf.xlu0 }
 0x9d2   : > { %3355 = vmatprep.mubr.msk.f32.mxu1 %vm1986_vm3, %v2665_v33 }
 0x9d5   : > { %v2666_v43 = vpop.trf.xlu0 }
 0x9d6   : > { %3356 = vmatmul.mubr.msk.f32.gmra.mrb[70].mxu1 %vm1986_vm3, %v2666_v43 }
 0x9d9   : > { %v2667_v58 = vpop.trf.xlu0 }
 0x9da   : > { %3358 = vmatprep.mubr.msk.f32.mxu1 %vm1986_vm3, %v2667_v58 }
 0x9dd   : > { %v2668_v24 = vpop.trf.xlu0 }
 0x9de   : > { %3359 = vmatmul.mubr.msk.f32.gmra.mrb[72].mxu1 %vm1986_vm3, %v2668_v24 }
 0x9e1   : > { %v2669_v61 = vpop.trf.xlu0 }
 0x9e2   : > { %3361 = vmatprep.mubr.msk.f32.mxu1 %vm1986_vm3, %v2669_v61 }
 0x9e5   : > { %v2670_v62 = vpop.trf.xlu0 }
 0x9e6   : > { %3362 = vmatmul.mubr.msk.f32.gmra.mrb[74].mxu1 %vm1986_vm3, %v2670_v62 }
 0x9e9   : > { %v2671_v0 = vpop.trf.xlu0 }
 0x9ea   : > { %3364 = vmatprep.mubr.msk.f32.mxu1 %vm1986_vm3, %v2671_v0 }
 0x9ed   : > { %v2672_v18 = vpop.trf.xlu0 }
 0x9ee   : > { %3365 = vmatmul.mubr.msk.f32.gmra.mrb[76].mxu1 %vm1986_vm3, %v2672_v18 }
 0x9f1   : > { %v2673_v16 = vpop.trf.xlu0 }
 0x9f2   : > { %3367 = vmatprep.mubr.msk.f32.mxu1 %vm1986_vm3, %v2673_v16 }
 0x9f5   : > { %v2674_v21 = vpop.trf.xlu0 }
 0x9f6   : > { %3368 = vmatmul.mubr.msk.f32.gmra.mrb[78].mxu1 %vm1986_vm3, %v2674_v21 }
 0x9f9   : > { %v2675_v20 = vpop.trf.xlu0 }
 0x9fa   : > { %3370 = vmatprep.mubr.msk.f32.mxu1 %vm1986_vm3, %v2675_v20 }
 0x9fd   : > { %v2676_v9 = vpop.trf.xlu0 }
 0x9fe   : > { %3371 = vmatmul.mubr.msk.f32.gmra.mrb[80].mxu1 %vm1986_vm3, %v2676_v9 }
 0xa9d   : > { %v4938_v22 = vpop.f32.mrb[66].mxu1 }
 0xa9e   : > { %v2871_v14 = vmul.f32 %v4938_v22, %v4938_v22  ;;  %v4942_v26 = vpop.f32.mrb[67].mxu1 }
 0xa9f   : > { %v2870_v19 = vmul.f32 %v4942_v26, %v4942_v26 }
 0xaa1   : > { %v2886_v7 = vadd.f32 %v2871_v14, %v2870_v19  ;;  %v4946_v23 = vpop.f32.mrb[68].mxu1 }
 0xaa2   : > { %v2801_v30 = vpop.f32.mrb[69].mxu1  ;;  %v2873_v59 = vmul.f32 %v4946_v23, %v4946_v23 }
 0xaa3   : > { %v2872_v6 = vmul.f32 %v2801_v30, %v2801_v30 }
 0xaa5   : > { %v2887_v12 = vadd.f32 %v2886_v7, %v2872_v6 }
 0xaa7   : > { %v2888_v8 = vadd.f32 %v2887_v12, %v2873_v59 }
 0xaa9   : > { %v3357_v31 = vpop.f32.mrb[70].mxu1 }
 0xaaa   : > { %v2811_v13 = vpop.f32.mrb[71].mxu1  ;;  %v2875_v29 = vmul.f32 %v3357_v31, %v3357_v31 }
 0xaab   : > { %v2874_v49 = vmul.f32 %v2811_v13, %v2811_v13 }
 0xaad   : > { %v2889_v4 = vadd.f32 %v2888_v8, %v2874_v49 }
 0xaaf   : > { %v2890_v34 = vadd.f32 %v2889_v4, %v2875_v29 }
 0xab1   : > { %v3360_v37 = vpop.f32.mrb[72].mxu1 }
 0xab2   : > { %v2821_v35 = vpop.f32.mrb[73].mxu1  ;;  %v2877_v25 = vmul.f32 %v3360_v37, %v3360_v37 }
 0xab3   : > { %v2876_v56 = vmul.f32 %v2821_v35, %v2821_v35 }
 0xab5   : > { %v2891_v46 = vadd.f32 %v2890_v34, %v2876_v56 }
 0xab7   : > { %v2892_v47 = vadd.f32 %v2891_v46, %v2877_v25 }
 0xab9   : > { %v3363_v10 = vpop.f32.mrb[74].mxu1 }
 0xaba   : > { %v2831_v51 = vpop.f32.mrb[75].mxu1  ;;  %v2879_v48 = vmul.f32 %v3363_v10, %v3363_v10 }
 0xabb   : > { %v2878_v1 = vmul.f32 %v2831_v51, %v2831_v51 }
 0xabd   : > { %v2893_v63 = vadd.f32 %v2892_v47, %v2878_v1 }
 0xabf   : > { %v2894_v15 = vadd.f32 %v2893_v63, %v2879_v48 }
 0xac1   : > { %v3366_v28 = vpop.f32.mrb[76].mxu1 }
 0xac2   : > { %v2841_v3 = vpop.f32.mrb[77].mxu1  ;;  %v2881_v40 = vmul.f32 %v3366_v28, %v3366_v28 }
 0xac3   : > { %v2880_v54 = vmul.f32 %v2841_v3, %v2841_v3 }
 0xac5   : > { %v2895_v53 = vadd.f32 %v2894_v15, %v2880_v54 }
 0xac7   : > { %v2896_v17 = vadd.f32 %v2895_v53, %v2881_v40 }
 0xac9   : > { %v3369_v5 = vpop.f32.mrb[78].mxu1 }
 0xaca   : > { %v2851_v45 = vpop.f32.mrb[79].mxu1  ;;  %v2883_v36 = vmul.f32 %v3369_v5, %v3369_v5 }
 0xacb   : > { %v2882_v32 = vmul.f32 %v2851_v45, %v2851_v45 }
 0xacd   : > { %v2897_v52 = vadd.f32 %v2896_v17, %v2882_v32 }
 0xacf   : > { %v2898_v55 = vadd.f32 %v2897_v52, %v2883_v36 }
 0xad1   : > { %v3372_v60 = vpop.f32.mrb[80].mxu1 }
 0xad2   : > { %v2861_v38 = vpop.f32.mrb[81].mxu1  ;;  %v2885_v44 = vmul.f32 %v3372_v60, %v3372_v60 }
 0xad3   : > { %v2884_v27 = vmul.f32 %v2861_v38, %v2861_v38 }
 0xad5   : > { %v2899_v2 = vadd.f32 %v2898_v55, %v2884_v27 }
 0xad7   : > { %v2900_v57 = vadd.f32 %v2899_v2, %v2885_v44 }
 0xad9   : > { %v2901_v11 = vrot.slane %v2900_v57, 4 }
 0xadb   : > { %v2902_v41 = vadd.f32 %v2901_v11, %v2900_v57 }
 0xadd   : > { %v2903_v50 = vrot.slane %v2902_v41, 2 }
 0xadf   : > { %v2904_v39 = vadd.f32 %v2903_v50, %v2902_v41 }
 0xae1   : > { %v2905_v42 = vrot.slane %v2904_v39, 1 }
 0xae3   : > { %v2906_v33 = vadd.f32 %v2905_v42, %v2904_v39 }
 0xae5   : > { %3885 = vrsqrt.f32 %v2906_v33  ;;  %vm2909_vm6 = vcmp.eq.f32.partialorder %v2906_v33, inf  ;;  %v2912_v24 = vand.u32 2147483648, %v2906_v33  ;;  %vm2911_vm7 = vcmp.eq.f32.partialorder %v2906_v33, 0.0 }
 0xaef   : > { %v3886_v43 = vpop.eup %3885 }
 0xaf0   : > { %v2908_v58 = vmul.f32 %v3886_v43, %v2906_v33 }
 0xaf2   : > { %v2910_v61 = vsel %vm2909_vm6, %v2906_v33, %v2908_v58 }
 0xaf3   : > { %v2913_v62 = vsel %vm2911_vm7, %v2912_v24, %v2910_v61 }
 0xaf4   : > { %v2914_v0 = vmax.f32 %v2913_v62, 1e-12 }
 0xaf6   : > { %3887 = vrcp.f32 %v2914_v0 }
 0xb00   : > { %v3888_v18 = vpop.eup %3887 }
 0xb01   : > { %v2916_v16 = vmul.f32 %v3888_v18, %v4942_v26  ;;  %v2917_v21 = vmul.f32 %v3888_v18, %v4938_v22  ;;  %v2918_v20 = vmul.f32 %v3888_v18, %v2801_v30  ;;  %v2919_v9 = vmul.f32 %v3888_v18, %v4946_v23 }
 0xb02   : > { %v2920_v14 = vmul.f32 %v3888_v18, %v2811_v13  ;;  %v2921_v19 = vmul.f32 %v3888_v18, %v3357_v31  ;;  %v2922_v7 = vmul.f32 %v3888_v18, %v2821_v35  ;;  %v2923_v6 = vmul.f32 %v3888_v18, %v3360_v37 }
 0xb03   : > { %v2924_v59 = vmul.f32 %v3888_v18, %v2831_v51  ;;  %v2925_v12 = vmul.f32 %v3888_v18, %v3363_v10  ;;  %v2926_v8 = vmul.f32 %v3888_v18, %v2841_v3  ;;  %v2927_v26 = vmul.f32 %v3888_v18, %v3366_v28  ;;  %2932 = vst [vmem:[%s4954_s27] sm:$0xff] %v2916_v16 }
 0xb04   : > { %2933 = vst [vmem:[%s4954_s27 + $0x8] sm:$0xff] %v2917_v21  ;;  %2934 = vst [vmem:[%s4954_s27 + $0x10] sm:$0xff] %v2918_v20  ;;  %v2928_v22 = vmul.f32 %v3888_v18, %v2851_v45  ;;  %v2929_v23 = vmul.f32 %v3888_v18, %v3369_v5  ;;  %v2930_v30 = vmul.f32 %v3888_v18, %v2861_v38 }
 0xb05   : > { %2935 = vst [vmem:[%s4954_s27 + $0x18] sm:$0xff] %v2919_v9  ;;  %v2931_v31 = vmul.f32 %v3888_v18, %v3372_v60  ;;  %2936 = vst [vmem:[%s4954_s27 + $0x20] sm:$0xff] %v2920_v14 }
 0xb06   : > { %2937 = vst [vmem:[%s4954_s27 + $0x28] sm:$0xff] %v2921_v19  ;;  %2938 = vst [vmem:[%s4954_s27 + $0x30] sm:$0xff] %v2922_v7 }
 0xb07   : > { %2939 = vst [vmem:[%s4954_s27 + $0x38] sm:$0xff] %v2923_v6  ;;  %2940 = vst [vmem:[%s4954_s27 + $0x40] sm:$0xff] %v2924_v59 }
 0xb08   : > { %2941 = vst [vmem:[%s4954_s27 + $0x48] sm:$0xff] %v2925_v12  ;;  %2942 = vst [vmem:[%s4954_s27 + $0x50] sm:$0xff] %v2926_v8 }
 0xb09   : > { %2943 = vst [vmem:[%s4954_s27 + $0x58] sm:$0xff] %v2927_v26  ;;  %2944 = vst [vmem:[%s4954_s27 + $0x60] sm:$0xff] %v2928_v22 }
 0xb0a   : > { %2945 = vst [vmem:[%s4954_s27 + $0x68] sm:$0xff] %v2929_v23  ;;  %2946 = vst [vmem:[%s4954_s27 + $0x70] sm:$0xff] %v2930_v30 }
 0xb0b   : > { %2947 = vst [vmem:[%s4954_s27 + $0x78] sm:$0xff] %v2931_v31 }
 0xb0c PF: > { %s15_s20 = sadd.s32 1, %s3911_s20   ;;  %s4990_s18 = smov %s3907_s19 }
 0xb0d   : > { %p12_p5 = scmp.ge.s32.totalorder %s15_s20, 4   ;;  %s4991_s19 = smov %s4993_s21 }
 0xb0f   :  { %14 = sbr.rel (!%p12_p5) target bundleno = 2 (0x2), region = 76 }

</bundles_post_ra>
